<compile_context>
chip_gen: v5e
topology: v5e:2x2
jax: 0.10.0
libtpu: 0.0.40
codegen_flags: <defaults>
</compile_context>

<pallas_src>
import math

import jax
import jax.numpy as jnp
from jax import lax
from jax.experimental import pallas as pl
from jax.experimental.pallas import tpu as pltpu

EPS = 1e-7          # module self.eps
IOU_EPS = 1e-9      # iou() default eps
TOPK = 10
DIS = 2.5
BIG = 100000.0
INVALID_COST = 1000000.0
GT_BLK = 16         # GTs processed per grid step in the cost kernel


# --------------------------------------------------------------------------
# Kernel 1: per-(batch, gt-block) cost + per-GT top-K fg-IoU sum.
# --------------------------------------------------------------------------
def _cost_kernel(gtb_s, lab_s, val_s, pb_ref, ps_ref, anc_ref,
                 cost_ref, tk_ref, s_ref, d_ref):
    b = pl.program_id(0)
    jblk = pl.program_id(1)
    gt_blk, hw_sub, _ = cost_ref.shape
    nc = ps_ref.shape[0]
    ng_pad = pl.num_programs(1) * gt_blk

    # Per-batch cache of the collapsed BCE tables (torch F.binary_cross_entropy
    # clamps logs at -100).  Computed once per image, not per GT step.
    @pl.when(jblk == 0)
    def _():
        def cbody(c, s_acc):
            p = ps_ref[c]                                    # (hw_sub, 128)
            logp = jnp.maximum(jnp.log(p), -100.0)
            log1p = jnp.maximum(jnp.log(1.0 - p), -100.0)
            d_ref[c] = log1p - logp
            return s_acc - log1p
        s_ref[...] = lax.fori_loop(0, nc, cbody,
                                   jnp.zeros((hw_sub, 128), jnp.float32))

    # GT-invariant per-anchor terms (hoisted out of the GT loop).
    px1 = pb_ref[0]
    py1 = pb_ref[1]
    px2 = pb_ref[2]
    py2 = pb_ref[3]
    w1h1 = (px2 - px1) * (py2 - py1 + IOU_EPS)
    apx = anc_ref[0]                                         # (apx + .5) * stride
    apy = anc_ref[1]
    dis = anc_ref[2]                                         # 2.5 * stride
    s_tab = s_ref[...]
    row_iota = lax.broadcasted_iota(jnp.int32, (gt_blk, 128), 0)

    tk_ref[...] = jnp.zeros((gt_blk, 128), jnp.float32)

    @pl.loop(0, gt_blk)                         # rolled loop: bounded live ranges
    def _(j):
        g = b * ng_pad + jblk * gt_blk + j
        vf = val_s[g] > 0

        @pl.when(vf)
        def _():
            gx1 = gtb_s[4 * g + 0]
            gy1 = gtb_s[4 * g + 1]
            gx2 = gtb_s[4 * g + 2]
            gy2 = gtb_s[4 * g + 3]
            lab = lab_s[g]

            # in-box / in-center masks
            in_boxes = (apx > gx1) & (apy > gy1) & (apx < gx2) & (apy < gy2)
            gcx = (gx1 + gx2) * 0.5
            gcy = (gy1 + gy2) * 0.5
            in_ctr = (apx > gcx - dis) & (apy > gcy - dis) & \
                     (apx < gcx + dis) & (apy < gcy + dis)
            fg = in_boxes | in_ctr
            both = in_boxes & in_ctr

            # IoU(pred, gt) (ciou=False, eps=1e-9)
            w2h2 = (gx2 - gx1) * (gy2 - gy1 + IOU_EPS)
            inter = jnp.maximum(jnp.minimum(px2, gx2) - jnp.maximum(px1, gx1), 0.0) * \
                    jnp.maximum(jnp.minimum(py2, gy2) - jnp.maximum(py1, gy1), 0.0)
            union = w1h1 + w2h2 - inter + IOU_EPS
            iou_v = inter / union
            iou_cost = -jnp.log(iou_v + EPS)

            # collapsed class-BCE cost + center-prior penalty, via selects
            base = s_tab + 3.0 * iou_cost
            cost = jnp.where(fg, base + d_ref[lab], base)
            cost = jnp.where(both, cost, cost + BIG)
            cost_ref[j] = cost

            # --- in-kernel top-K fg-IoU sum (tie-aware masked max passes) ---
            # fg IoU values are in [0,1]; -1 is the "not foreground" sentinel.
            masked0 = jnp.where(fg, iou_v, -1.0)

            def tk_body(_, carry):
                masked, ssum, rem = carry
                mval = jnp.max(masked)
                eq = masked == mval
                cnt = jnp.sum(eq.astype(jnp.float32))
                take = jnp.minimum(cnt, rem)
                ok = mval >= 0.0
                ssum = ssum + jnp.where(ok, mval * take, 0.0)
                rem = rem - jnp.where(ok, take, 0.0)
                masked = jnp.where(eq, -1.0, masked)
                return masked, ssum, rem

            _, ssum, _ = lax.fori_loop(
                0, TOPK, tk_body,
                (masked0, jnp.float32(0.0), jnp.float32(TOPK)))
            tk_ref[...] = tk_ref[...] + \
                (row_iota == j).astype(jnp.float32) * ssum

        @pl.when(jnp.logical_not(vf))
        def _():
            # padded / invalid GT slot: constant cost row, zero top-K sum
            cost_ref[j] = jnp.full((hw_sub, 128), INVALID_COST, jnp.float32)


def _cost_call(gtb_s, lab_s, val_s, pb4, ps4, anc, *, ng_pad, gt_blk, vmem_limit):
    bs = pb4.shape[0]
    nc = ps4.shape[1]
    hw_sub = pb4.shape[2]
    nblk = ng_pad // gt_blk
    smem = pl.BlockSpec(memory_space=pltpu.MemorySpace.SMEM)
    cost_sd = jax.ShapeDtypeStruct((bs, ng_pad, hw_sub, 128), jnp.float32)
    tk_sd = jax.ShapeDtypeStruct((bs, nblk, gt_blk, 128), jnp.float32)
    return pl.pallas_call(
        _cost_kernel,
        out_shape=(cost_sd, tk_sd),
        grid=(bs, nblk),
        in_specs=[smem, smem, smem,
                  pl.BlockSpec((None, 4, hw_sub, 128), lambda b, j: (b, 0, 0, 0)),
                  pl.BlockSpec((None, nc, hw_sub, 128), lambda b, j: (b, 0, 0, 0)),
                  pl.BlockSpec((3, hw_sub, 128), lambda b, j: (0, 0, 0))],
        out_specs=(pl.BlockSpec((None, gt_blk, hw_sub, 128),
                                lambda b, j: (b, j, 0, 0)),
                   pl.BlockSpec((None, None, gt_blk, 128),
                                lambda b, j: (b, j, 0, 0))),
        scratch_shapes=[pltpu.VMEM((hw_sub, 128), jnp.float32),
                        pltpu.VMEM((nc, hw_sub, 128), jnp.float32)],
        compiler_params=pltpu.CompilerParams(
            # bs parallel (v7x 2-TC sharding); gt axis arbitrary so the
            # per-batch scratch cache (pl.when j==0) stays valid.
            dimension_semantics=("parallel", "arbitrary"),
            vmem_limit_bytes=vmem_limit),
    )(gtb_s, lab_s, val_s, pb4, ps4, anc)


# --------------------------------------------------------------------------
# Kernel 2: per-batch masked CIoU / BCE-cls / BCE-conf, reduced to scalars.
# --------------------------------------------------------------------------
def _loss_kernel(gtb_s, lab_s, val_s, atg_s,
                 pb_ref, ps_ref, pc_ref, at1_ref, ptm_ref, pv_ref,
                 box_ref, cls_ref, conf_ref,
                 d2_ref, box_sc, cls_sc, any_sc):
    b = pl.program_id(0)
    ng_pad = ptm_ref.shape[0]
    nc, hw_sub, _ = ps_ref.shape

    # GT-invariant per-anchor terms (hoisted).
    px1 = pb_ref[0]
    py1 = pb_ref[1]
    px2 = pb_ref[2]
    py2 = pb_ref[3]
    w1h1 = (px2 - px1) * (py2 - py1 + IOU_EPS)
    psx = px1 + px2
    psy = py1 + py2
    at1 = at1_ref[...]                                       # atan(w1/h1) per anchor

    # S2 = -sum_c log(1 - p_c + eps) and D2[c] = log(1-p_c+eps) - log(p_c+eps)
    # (module BCEloss semantics, no clamp).  D2 is cached so per-GT work is a
    # row gather instead of two tile logs.
    def cbody(c, s_acc):
        p = ps_ref[c]
        l1p = jnp.log(1.0 - p + EPS)
        d2_ref[c] = l1p - jnp.log(p + EPS)
        return s_acc - l1p
    s2 = lax.fori_loop(0, nc, cbody, jnp.zeros((hw_sub, 128), jnp.float32))

    box_sc[...] = jnp.zeros((hw_sub, 128), jnp.float32)
    cls_sc[...] = jnp.zeros((hw_sub, 128), jnp.float32)
    any_sc[...] = jnp.zeros((hw_sub, 128), jnp.float32)

    @pl.loop(0, ng_pad)
    def _(i):
        g = b * ng_pad + i

        @pl.when(val_s[g] > 0)       # skip padded / invalid GT slots entirely
        def _():
            gx1 = gtb_s[4 * g + 0]
            gy1 = gtb_s[4 * g + 1]
            gx2 = gtb_s[4 * g + 2]
            gy2 = gtb_s[4 * g + 3]
            lab = lab_s[g]
            at2 = atg_s[g]

            pm = ptm_ref[i].astype(jnp.float32)              # bf16 -> f32 mask row

            # CIoU(pred, gt), eps = 1e-9
            w2 = gx2 - gx1
            h2 = gy2 - gy1 + IOU_EPS
            inter = jnp.maximum(jnp.minimum(px2, gx2) - jnp.maximum(px1, gx1), 0.0) * \
                    jnp.maximum(jnp.minimum(py2, gy2) - jnp.maximum(py1, gy1), 0.0)
            union = w1h1 + w2 * h2 - inter + IOU_EPS
            iou_v = inter / union
            cw = jnp.maximum(px2, gx2) - jnp.minimum(px1, gx1)
            ch = jnp.maximum(py2, gy2) - jnp.minimum(py1, gy1)
            c2 = cw * cw + ch * ch + IOU_EPS
            d2 = ((gx1 + gx2 - psx) ** 2 + (gy1 + gy2 - psy) ** 2) * 0.25
            v = (4.0 / (math.pi ** 2)) * (at2 - at1) ** 2
            alpha = v / (v - iou_v + (1.0 + IOU_EPS))
            ciou = iou_v - (d2 / c2 + v * alpha)

            box_sc[...] = box_sc[...] + pm * (1.0 - ciou)
            # collapsed class BCE: sum_c BCE(onehot(lab), p) = S2 + D2[lab]
            cls_sc[...] = cls_sc[...] + pm * (s2 + d2_ref[lab])
            any_sc[...] = any_sc[...] + pm

    # objectness BCE over all (real) anchors; pv masks out hw padding
    pc = pc_ref[...]
    gt_conf = (any_sc[...] > 0.0).astype(jnp.float32)
    conf_bce = (-gt_conf * jnp.log(pc + EPS)
                - (1.0 - gt_conf) * jnp.log(1.0 - pc + EPS)) * pv_ref[...]

    # in-kernel hw reduction -> per-batch scalars (tiny aligned writeback)
    box_ref[...] = jnp.zeros((8, 128), jnp.float32) + jnp.sum(box_sc[...])
    cls_ref[...] = jnp.zeros((8, 128), jnp.float32) + jnp.sum(cls_sc[...])
    conf_ref[...] = jnp.zeros((8, 128), jnp.float32) + jnp.sum(conf_bce)


def _loss_call(gtb_s, lab_s, val_s, atg_s, pb4, ps4, pc3, at13, ptm4, pv2,
               *, vmem_limit):
    bs = pb4.shape[0]
    nc = ps4.shape[1]
    hw_sub = pb4.shape[2]
    ng_pad = ptm4.shape[1]
    smem = pl.BlockSpec(memory_space=pltpu.MemorySpace.SMEM)
    out_sd = jax.ShapeDtypeStruct((bs, 8, 128), jnp.float32)
    return pl.pallas_call(
        _loss_kernel,
        out_shape=(out_sd, out_sd, out_sd),
        grid=(bs,),
        in_specs=[smem, smem, smem, smem,
                  pl.BlockSpec((None, 4, hw_sub, 128), lambda b: (b, 0, 0, 0)),
                  pl.BlockSpec((None, nc, hw_sub, 128), lambda b: (b, 0, 0, 0)),
                  pl.BlockSpec((None, hw_sub, 128), lambda b: (b, 0, 0)),
                  pl.BlockSpec((None, hw_sub, 128), lambda b: (b, 0, 0)),
                  pl.BlockSpec((None, ng_pad, hw_sub, 128), lambda b: (b, 0, 0, 0)),
                  pl.BlockSpec((hw_sub, 128), lambda b: (0, 0))],
        out_specs=(pl.BlockSpec((None, 8, 128), lambda b: (b, 0, 0)),
                   pl.BlockSpec((None, 8, 128), lambda b: (b, 0, 0)),
                   pl.BlockSpec((None, 8, 128), lambda b: (b, 0, 0))),
        scratch_shapes=[pltpu.VMEM((nc, hw_sub, 128), jnp.float32),
                        pltpu.VMEM((hw_sub, 128), jnp.float32),
                        pltpu.VMEM((hw_sub, 128), jnp.float32),
                        pltpu.VMEM((hw_sub, 128), jnp.float32)],
        compiler_params=pltpu.CompilerParams(
            dimension_semantics=("parallel",),
            vmem_limit_bytes=vmem_limit),
    )(gtb_s, lab_s, val_s, atg_s, pb4, ps4, pc3, at13, ptm4, pv2)


# --------------------------------------------------------------------------
# Full simOTA.forward
# --------------------------------------------------------------------------
def simota_forward(pred_boxes, gt_boxes, mask_gt, pred_scores, pred_conf,
                   gt_labels, anchor_points, stride_tensor):
    pred_boxes = pred_boxes.astype(jnp.float32)
    pred_scores = pred_scores.astype(jnp.float32)
    pred_conf = pred_conf.astype(jnp.float32)
    gt_boxes = gt_boxes.astype(jnp.float32)
    anchor_points = anchor_points.astype(jnp.float32)
    stride_tensor = stride_tensor.astype(jnp.float32)

    bs, hw, _ = pred_boxes.shape
    ng = gt_boxes.shape[1]
    nc = pred_scores.shape[2]

    hw_pad = ((hw + 127) // 128) * 128
    hw_sub = hw_pad // 128
    gt_blk = GT_BLK if ng >= GT_BLK else ng
    ng_pad = ((ng + gt_blk - 1) // gt_blk) * gt_blk

    def to_tiles(x):   # (..., hw) -> (..., hw_sub, 128), zero-padded
        if hw_pad != hw:
            pad = [(0, 0)] * (x.ndim - 1) + [(0, hw_pad - hw)]
            x = jnp.pad(x, pad)
        return x.reshape(x.shape[:-1] + (hw_sub, 128))

    # ---- anchor-major lane-dense layouts ----
    pb4 = to_tiles(jnp.transpose(pred_boxes, (0, 2, 1)))          # (bs,4,hw_sub,128)
    ps4 = to_tiles(jnp.transpose(pred_scores, (0, 2, 1)))         # (bs,nc,hw_sub,128)
    pc3 = to_tiles(pred_conf[..., 0])                             # (bs,hw_sub,128)

    st = stride_tensor[:, 0]
    apx = (anchor_points[:, 0] + 0.5) * st
    apy = (anchor_points[:, 1] + 0.5) * st
    dis = DIS * st
    anc = to_tiles(jnp.stack([apx, apy, dis], axis=0))            # (3,hw_sub,128)
    pv2 = to_tiles(jnp.ones((hw,), jnp.float32))                  # (hw_sub,128)

    # ---- per-GT scalar tables (flat 1-D -> cheap SMEM) ----
    gtb_p = jnp.pad(gt_boxes, ((0, 0), (0, ng_pad - ng), (0, 0)))
    lab_p = jnp.pad(gt_labels[..., 0].astype(jnp.int32), ((0, 0), (0, ng_pad - ng)))
    val_p = jnp.pad(mask_gt.astype(jnp.int32), ((0, 0), (0, ng_pad - ng)))
    gtb_s = gtb_p.reshape(-1)                                     # (bs*ng_pad*4,)
    lab_s = lab_p.reshape(-1)
    val_s = val_p.reshape(-1)

    # ---- explicit VMEM budgets (v7x has only 64 MiB physical) ----
    f32 = 4
    cost_vmem = (2 * ((4 + nc + 3) * hw_sub * 128 * f32
                      + gt_blk * hw_sub * 128 * f32 + gt_blk * 128 * f32)
                 + (1 + nc) * hw_sub * 128 * f32 + (4 << 20))
    cost_vmem = int(min(max(cost_vmem, 32 << 20), 100 << 20))
    loss_vmem = (2 * ((4 + nc + 2) * hw_sub * 128 * f32
                      + ng_pad * hw_sub * 128 * 2 + 3 * 8 * 128 * f32)
                 + (nc + 3) * hw_sub * 128 * f32 + hw_sub * 128 * f32 + (4 << 20))
    loss_vmem = int(min(max(loss_vmem, 32 << 20), 100 << 20))

    cost4, tk4 = _cost_call(gtb_s, lab_s, val_s, pb4, ps4, anc,
                            ng_pad=ng_pad, gt_blk=gt_blk, vmem_limit=cost_vmem)
    cost = cost4.reshape(bs, ng_pad, hw_pad)[:, :ng, :hw]
    topk_sum = tk4[:, :, :, 0].reshape(bs, ng_pad)[:, :ng]        # (bs, ng)

    # ---- dynamic-k SimOTA assignment (data-dependent sizes -> plain JAX) ----
    valid = mask_gt.astype(bool)                                  # (bs, ng)
    # torch: topk-iou sum, clamp(min=1), .long()  ->  trunc(max(sum, 1))
    pt_num = jnp.floor(jnp.maximum(topk_sum, 1.0)).astype(jnp.int32)   # in [1, TOPK]

    # "pt_num lowest-cost anchors" via a threshold on the pt_num-th smallest cost
    # TODO(synk): exact float ties at the threshold admit > pt_num anchors; the
    # torch reference breaks such ties by index (assumed negligible for floats).
    neg_small, _ = lax.top_k(-cost, TOPK)
    small_sorted = -neg_small                                     # ascending costs
    thr = jnp.take_along_axis(small_sorted, (pt_num - 1)[..., None], axis=-1)
    pt_mask = (cost <= thr) & valid[..., None]                    # (bs, ng, hw)

    # resolve anchors claimed by >1 gt: keep the minimum-cost gt
    overlap = jnp.sum(pt_mask, axis=1) > 1
    best_gt = jnp.argmin(cost, axis=1)
    best_onehot = jax.nn.one_hot(best_gt, ng, axis=1) > 0.5
    pt_mask = jnp.where(overlap[:, None, :], best_onehot, pt_mask)

    ptm_f = pt_mask.astype(jnp.float32)
    # clamp avoids 0/0 when an image has no valid GT (torch would emit NaN/inf)
    num_pts = jnp.maximum(jnp.sum(ptm_f, axis=(1, 2)), 1.0)       # (bs,)
    ptm4 = to_tiles(jnp.pad(ptm_f, ((0, 0), (0, ng_pad - ng), (0, 0)))
                    ).astype(jnp.bfloat16)

    # TODO(synk): arctan has no Pallas/Mosaic TPU lowering; the two CIoU
    # aspect-ratio atan terms are precomputed here and fed into the kernel.
    w1 = pred_boxes[:, :, 2] - pred_boxes[:, :, 0]
    h1 = pred_boxes[:, :, 3] - pred_boxes[:, :, 1] + IOU_EPS
    at13 = to_tiles(jnp.arctan(w1 / h1))                          # (bs,hw_sub,128)
    w2 = gtb_p[..., 2] - gtb_p[..., 0]
    h2 = gtb_p[..., 3] - gtb_p[..., 1] + IOU_EPS
    atg_s = jnp.arctan(w2 / h2).reshape(-1)                       # (bs*ng_pad,)

    box_o, cls_o, conf_o = _loss_call(gtb_s, lab_s, val_s, atg_s,
                                      pb4, ps4, pc3, at13, ptm4, pv2,
                                      vmem_limit=loss_vmem)
    box_b = box_o[:, 0, 0]
    cls_b = cls_o[:, 0, 0]
    conf_b = conf_o[:, 0, 0]

    loss0 = jnp.sum(box_b / num_pts)
    loss1 = jnp.sum(cls_b / num_pts)
    loss2 = jnp.sum(conf_b / num_pts)
    return loss0, loss1, loss2


if __name__ == "__main__":
    key = jax.random.PRNGKey(0)
    bs, ng, nc = 2, 4, 8
    fh = fw = 16
    hw = fh * fw
    stride = 8.0

    ys, xs = jnp.meshgrid(jnp.arange(fh, dtype=jnp.float32),
                          jnp.arange(fw, dtype=jnp.float32), indexing="ij")
    anchor_points = jnp.stack([xs.reshape(-1), ys.reshape(-1)], axis=-1)   # (hw, 2)
    stride_tensor = jnp.full((hw, 1), stride, jnp.float32)

    k1, k2, k3, k4, k5, k6, k7 = jax.random.split(key, 7)

    # predicted boxes roughly centred on their anchors
    ctr = (anchor_points[None] + 0.5) * stride + \
        jax.random.uniform(k1, (bs, hw, 2), minval=-4.0, maxval=4.0)
    wh = jax.random.uniform(k2, (bs, hw, 2), minval=6.0, maxval=40.0)
    pred_boxes = jnp.concatenate([ctr - wh / 2, ctr + wh / 2], axis=-1)    # (bs, hw, 4)

    # ground-truth boxes + validity mask (padded gts zeroed)
    gctr = jax.random.uniform(k3, (bs, ng, 2), minval=20.0, maxval=108.0)
    gwh = jax.random.uniform(k4, (bs, ng, 2), minval=24.0, maxval=64.0)
    gt_boxes = jnp.concatenate([gctr - gwh / 2, gctr + gwh / 2], axis=-1)  # (bs, ng, 4)
    mask_gt = jnp.array([[True, True, True, False],
                         [True, True, False, False]])
    gt_boxes = gt_boxes * mask_gt[..., None]
    gt_labels = jax.random.randint(k5, (bs, ng, 1), 0, nc)

    pred_scores = jax.nn.sigmoid(jax.random.normal(k6, (bs, hw, nc)))
    pred_conf = jax.nn.sigmoid(jax.random.normal(k7, (bs, hw, 1)))

    fwd = jax.jit(simota_forward)
    l0, l1, l2 = fwd(pred_boxes, gt_boxes, mask_gt, pred_scores, pred_conf,
                     gt_labels, anchor_points, stride_tensor)
    jax.block_until_ready((l0, l1, l2))
    print("KERNEL_OK")
</pallas_src>

<mosaic_0001>
module attributes {stable_mosaic.version = 11 : i64} {
  func.func @_cost_kernel(%arg0: i32, %arg1: i32, %arg2: memref<32xf32, #tpu.memory_space<smem>>, %arg3: memref<8xi32, #tpu.memory_space<smem>>, %arg4: memref<8xi32, #tpu.memory_space<smem>>, %arg5: memref<1x4x2x128xf32, #tpu.memory_space<vmem>>, %arg6: memref<1x8x2x128xf32, #tpu.memory_space<vmem>>, %arg7: memref<3x2x128xf32, #tpu.memory_space<vmem>>, %arg8: memref<1x4x2x128xf32, #tpu.memory_space<vmem>>, %arg9: memref<1x1x4x128xf32, #tpu.memory_space<vmem>>, %arg10: memref<2x128xf32, #tpu.memory_space<vmem>>, %arg11: memref<8x2x128xf32, #tpu.memory_space<vmem>>) attributes {dimension_semantics = [#tpu.dimension_semantics<parallel>, #tpu.dimension_semantics<arbitrary>], iteration_bounds = array<i64: 2, 1>, scalar_prefetch = 0 : i64, scratch_operands = 2 : i64, tpu.core_type = #tpu.core_type<tc>, window_params = [{transform_indices = @transform_0, window_bounds = array<i64: 32>}, {transform_indices = @transform_1, window_bounds = array<i64: 8>}, {transform_indices = @transform_2, window_bounds = array<i64: 8>}, {transform_indices = @transform_3, window_bounds = array<i64: 1, 4, 2, 128>}, {transform_indices = @transform_4, window_bounds = array<i64: 1, 8, 2, 128>}, {pipeline_mode = #tpu.pipeline_mode<synchronous>, transform_indices = @transform_5, window_bounds = array<i64: 3, 2, 128>}, {transform_indices = @transform_6, window_bounds = array<i64: 1, 4, 2, 128>}, {transform_indices = @transform_7, window_bounds = array<i64: 1, 1, 4, 128>}]} {
    %c0_i32 = arith.constant 0 : i32
    %0 = arith.cmpi eq, %arg1, %c0_i32 : i32
    %1 = arith.extui %0 : i1 to i32
    %c0_i32_0 = arith.constant 0 : i32
    %2 = arith.cmpi ne, %1, %c0_i32_0 : i32
    scf.if %2 {
      %cst_31 = arith.constant 0.000000e+00 : f32
      %29 = vector.broadcast %cst_31 : f32 to vector<2x128xf32>
      %c0_i32_32 = arith.constant 0 : i32
      %c8_i32 = arith.constant 8 : i32
      %30 = arith.addi %c0_i32_32, %c8_i32 : i32
      %c1_i32_33 = arith.constant 1 : i32
      %31 = scf.for %arg12 = %c0_i32_32 to %30 step %c1_i32_33 iter_args(%arg13 = %29) -> (vector<2x128xf32>)  : i32 {
        %c0_37 = arith.constant 0 : index
        %33 = arith.index_cast %arg12 : i32 to index
        %c0_38 = arith.constant 0 : index
        %c0_39 = arith.constant 0 : index
        %34 = vector.load %arg6[%c0_37, %33, %c0_38, %c0_39] : memref<1x8x2x128xf32, #tpu.memory_space<vmem>>, vector<1x1x2x128xf32>
        %35 = vector.shape_cast %34 : vector<1x1x2x128xf32> to vector<2x128xf32>
        %36 = math.log %35 : vector<2x128xf32>
        %cst_40 = arith.constant -1.000000e+02 : f32
        %37 = vector.broadcast %cst_40 : f32 to vector<2x128xf32>
        %38 = arith.maximumf %36, %37 : vector<2x128xf32>
        %cst_41 = arith.constant 1.000000e+00 : f32
        %39 = vector.broadcast %cst_41 : f32 to vector<2x128xf32>
        %40 = arith.subf %39, %35 : vector<2x128xf32>
        %41 = math.log %40 : vector<2x128xf32>
        %cst_42 = arith.constant -1.000000e+02 : f32
        %42 = vector.broadcast %cst_42 : f32 to vector<2x128xf32>
        %43 = arith.maximumf %41, %42 : vector<2x128xf32>
        %44 = arith.subf %43, %38 : vector<2x128xf32>
        %45 = arith.index_cast %arg12 : i32 to index
        %c0_43 = arith.constant 0 : index
        %c0_44 = arith.constant 0 : index
        %46 = vector.load %arg11[%45, %c0_43, %c0_44] : memref<8x2x128xf32, #tpu.memory_space<vmem>>, vector<1x2x128xf32>
        %47 = vector.shape_cast %46 : vector<1x2x128xf32> to vector<2x128xf32>
        %48 = vector.shape_cast %44 : vector<2x128xf32> to vector<1x2x128xf32>
        tpu.vector_store %arg11[%45, %c0_43, %c0_44], %48 {strides = array<i32>} : memref<8x2x128xf32, #tpu.memory_space<vmem>>, vector<1x2x128xf32>,
        %49 = arith.subf %arg13, %43 : vector<2x128xf32>
        scf.yield %49 : vector<2x128xf32>
      }
      %c8_i32_34 = arith.constant 8 : i32
      %c0_35 = arith.constant 0 : index
      %c0_36 = arith.constant 0 : index
      %32 = vector.load %arg10[%c0_35, %c0_36] : memref<2x128xf32, #tpu.memory_space<vmem>>, vector<2x128xf32>
      tpu.vector_store %arg10[%c0_35, %c0_36], %31 {strides = array<i32>} : memref<2x128xf32, #tpu.memory_space<vmem>>, vector<2x128xf32>,
    } else {
    }
    %c0 = arith.constant 0 : index
    %c0_1 = arith.constant 0 : index
    %c0_2 = arith.constant 0 : index
    %c0_3 = arith.constant 0 : index
    %3 = vector.load %arg5[%c0, %c0_1, %c0_2, %c0_3] : memref<1x4x2x128xf32, #tpu.memory_space<vmem>>, vector<1x1x2x128xf32>
    %4 = vector.shape_cast %3 : vector<1x1x2x128xf32> to vector<2x128xf32>
    %c0_4 = arith.constant 0 : index
    %c1 = arith.constant 1 : index
    %c0_5 = arith.constant 0 : index
    %c0_6 = arith.constant 0 : index
    %5 = vector.load %arg5[%c0_4, %c1, %c0_5, %c0_6] : memref<1x4x2x128xf32, #tpu.memory_space<vmem>>, vector<1x1x2x128xf32>
    %6 = vector.shape_cast %5 : vector<1x1x2x128xf32> to vector<2x128xf32>
    %c0_7 = arith.constant 0 : index
    %c2 = arith.constant 2 : index
    %c0_8 = arith.constant 0 : index
    %c0_9 = arith.constant 0 : index
    %7 = vector.load %arg5[%c0_7, %c2, %c0_8, %c0_9] : memref<1x4x2x128xf32, #tpu.memory_space<vmem>>, vector<1x1x2x128xf32>
    %8 = vector.shape_cast %7 : vector<1x1x2x128xf32> to vector<2x128xf32>
    %c0_10 = arith.constant 0 : index
    %c3 = arith.constant 3 : index
    %c0_11 = arith.constant 0 : index
    %c0_12 = arith.constant 0 : index
    %9 = vector.load %arg5[%c0_10, %c3, %c0_11, %c0_12] : memref<1x4x2x128xf32, #tpu.memory_space<vmem>>, vector<1x1x2x128xf32>
    %10 = vector.shape_cast %9 : vector<1x1x2x128xf32> to vector<2x128xf32>
    %11 = arith.subf %8, %4 : vector<2x128xf32>
    %12 = arith.subf %10, %6 : vector<2x128xf32>
    %cst = arith.constant 9.99999971E-10 : f32
    %13 = vector.broadcast %cst : f32 to vector<2x128xf32>
    %14 = arith.addf %12, %13 : vector<2x128xf32>
    %15 = arith.mulf %11, %14 : vector<2x128xf32>
    %c0_13 = arith.constant 0 : index
    %c0_14 = arith.constant 0 : index
    %c0_15 = arith.constant 0 : index
    %16 = vector.load %arg7[%c0_13, %c0_14, %c0_15] : memref<3x2x128xf32, #tpu.memory_space<vmem>>, vector<1x2x128xf32>
    %17 = vector.shape_cast %16 : vector<1x2x128xf32> to vector<2x128xf32>
    %c1_16 = arith.constant 1 : index
    %c0_17 = arith.constant 0 : index
    %c0_18 = arith.constant 0 : index
    %18 = vector.load %arg7[%c1_16, %c0_17, %c0_18] : memref<3x2x128xf32, #tpu.memory_space<vmem>>, vector<1x2x128xf32>
    %19 = vector.shape_cast %18 : vector<1x2x128xf32> to vector<2x128xf32>
    %c2_19 = arith.constant 2 : index
    %c0_20 = arith.constant 0 : index
    %c0_21 = arith.constant 0 : index
    %20 = vector.load %arg7[%c2_19, %c0_20, %c0_21] : memref<3x2x128xf32, #tpu.memory_space<vmem>>, vector<1x2x128xf32>
    %21 = vector.shape_cast %20 : vector<1x2x128xf32> to vector<2x128xf32>
    %c0_22 = arith.constant 0 : index
    %c0_23 = arith.constant 0 : index
    %22 = vector.load %arg10[%c0_22, %c0_23] : memref<2x128xf32, #tpu.memory_space<vmem>>, vector<2x128xf32>
    %23 = tpu.iota {dimensions = array<i32: 0>} : vector<4x128xi32>
    %cst_24 = arith.constant 0.000000e+00 : f32
    %24 = vector.broadcast %cst_24 : f32 to vector<4x128xf32>
    %c0_25 = arith.constant 0 : index
    %c0_26 = arith.constant 0 : index
    %c0_27 = arith.constant 0 : index
    %c0_28 = arith.constant 0 : index
    %25 = vector.load %arg9[%c0_25, %c0_26, %c0_27, %c0_28] : memref<1x1x4x128xf32, #tpu.memory_space<vmem>>, vector<1x1x4x128xf32>
    %26 = vector.shape_cast %25 : vector<1x1x4x128xf32> to vector<4x128xf32>
    %27 = vector.shape_cast %24 : vector<4x128xf32> to vector<1x1x4x128xf32>
    tpu.vector_store %arg9[%c0_25, %c0_26, %c0_27, %c0_28], %27 {strides = array<i32>} : memref<1x1x4x128xf32, #tpu.memory_space<vmem>>, vector<1x1x4x128xf32>,
    %c0_i32_29 = arith.constant 0 : i32
    %c4_i32 = arith.constant 4 : i32
    %28 = arith.addi %c0_i32_29, %c4_i32 : i32
    %c1_i32 = arith.constant 1 : i32
    scf.for %arg12 = %c0_i32_29 to %28 step %c1_i32  : i32 {
      %c1_i32_31 = arith.constant 1 : i32
      %29 = arith.muli %arg12, %c1_i32_31 : i32
      %c0_i32_32 = arith.constant 0 : i32
      %30 = arith.addi %c0_i32_32, %29 : i32
      %c4_i32_33 = arith.constant 4 : i32
      %31 = arith.muli %arg0, %c4_i32_33 : i32
      %c4_i32_34 = arith.constant 4 : i32
      %32 = arith.muli %arg1, %c4_i32_34 : i32
      %33 = arith.addi %31, %32 : i32
      %34 = arith.addi %33, %30 : i32
      %35 = arith.index_cast %34 : i32 to index
      %36 = memref.load %arg4[%35] : memref<8xi32, #tpu.memory_space<smem>>
      %c0_i32_35 = arith.constant 0 : i32
      %37 = arith.cmpi sgt, %36, %c0_i32_35 : i32
      %38 = arith.extui %37 : i1 to i32
      %c0_i32_36 = arith.constant 0 : i32
      %39 = arith.cmpi ne, %38, %c0_i32_36 : i32
      scf.if %39 {
        %c4_i32_38 = arith.constant 4 : i32
        %43 = arith.muli %c4_i32_38, %34 : i32
        %c0_i32_39 = arith.constant 0 : i32
        %44 = arith.addi %43, %c0_i32_39 : i32
        %45 = arith.index_cast %44 : i32 to index
        %46 = memref.load %arg2[%45] : memref<32xf32, #tpu.memory_space<smem>>
        %c4_i32_40 = arith.constant 4 : i32
        %47 = arith.muli %c4_i32_40, %34 : i32
        %c1_i32_41 = arith.constant 1 : i32
        %48 = arith.addi %47, %c1_i32_41 : i32
        %49 = arith.index_cast %48 : i32 to index
        %50 = memref.load %arg2[%49] : memref<32xf32, #tpu.memory_space<smem>>
        %c4_i32_42 = arith.constant 4 : i32
        %51 = arith.muli %c4_i32_42, %34 : i32
        %c2_i32 = arith.constant 2 : i32
        %52 = arith.addi %51, %c2_i32 : i32
        %53 = arith.index_cast %52 : i32 to index
        %54 = memref.load %arg2[%53] : memref<32xf32, #tpu.memory_space<smem>>
        %c4_i32_43 = arith.constant 4 : i32
        %55 = arith.muli %c4_i32_43, %34 : i32
        %c3_i32 = arith.constant 3 : i32
        %56 = arith.addi %55, %c3_i32 : i32
        %57 = arith.index_cast %56 : i32 to index
        %58 = memref.load %arg2[%57] : memref<32xf32, #tpu.memory_space<smem>>
        %59 = arith.index_cast %34 : i32 to index
        %60 = memref.load %arg3[%59] : memref<8xi32, #tpu.memory_space<smem>>
        %61 = vector.broadcast %46 : f32 to vector<2x128xf32>
        %62 = arith.cmpf ogt, %17, %61 : vector<2x128xf32>
        %63 = vector.broadcast %50 : f32 to vector<2x128xf32>
        %64 = arith.cmpf ogt, %19, %63 : vector<2x128xf32>
        %65 = arith.andi %62, %64 : vector<2x128xi1>
        %66 = vector.broadcast %54 : f32 to vector<2x128xf32>
        %67 = arith.cmpf olt, %17, %66 : vector<2x128xf32>
        %68 = arith.andi %65, %67 : vector<2x128xi1>
        %69 = vector.broadcast %58 : f32 to vector<2x128xf32>
        %70 = arith.cmpf olt, %19, %69 : vector<2x128xf32>
        %71 = arith.andi %68, %70 : vector<2x128xi1>
        %72 = arith.addf %46, %54 : f32
        %cst_44 = arith.constant 5.000000e-01 : f32
        %73 = arith.mulf %72, %cst_44 : f32
        %74 = arith.addf %50, %58 : f32
        %cst_45 = arith.constant 5.000000e-01 : f32
        %75 = arith.mulf %74, %cst_45 : f32
        %76 = vector.broadcast %73 : f32 to vector<2x128xf32>
        %77 = arith.subf %76, %21 : vector<2x128xf32>
        %78 = arith.cmpf ogt, %17, %77 : vector<2x128xf32>
        %79 = vector.broadcast %75 : f32 to vector<2x128xf32>
        %80 = arith.subf %79, %21 : vector<2x128xf32>
        %81 = arith.cmpf ogt, %19, %80 : vector<2x128xf32>
        %82 = arith.andi %78, %81 : vector<2x128xi1>
        %83 = vector.broadcast %73 : f32 to vector<2x128xf32>
        %84 = arith.addf %83, %21 : vector<2x128xf32>
        %85 = arith.cmpf olt, %17, %84 : vector<2x128xf32>
        %86 = arith.andi %82, %85 : vector<2x128xi1>
        %87 = vector.broadcast %75 : f32 to vector<2x128xf32>
        %88 = arith.addf %87, %21 : vector<2x128xf32>
        %89 = arith.cmpf olt, %19, %88 : vector<2x128xf32>
        %90 = arith.andi %86, %89 : vector<2x128xi1>
        %91 = arith.ori %71, %90 : vector<2x128xi1>
        %92 = arith.andi %71, %90 : vector<2x128xi1>
        %93 = arith.subf %54, %46 : f32
        %94 = arith.subf %58, %50 : f32
        %cst_46 = arith.constant 9.99999971E-10 : f32
        %95 = arith.addf %94, %cst_46 : f32
        %96 = arith.mulf %93, %95 : f32
        %97 = vector.broadcast %54 : f32 to vector<2x128xf32>
        %98 = arith.minimumf %8, %97 : vector<2x128xf32>
        %99 = vector.broadcast %46 : f32 to vector<2x128xf32>
        %100 = arith.maximumf %4, %99 : vector<2x128xf32>
        %101 = arith.subf %98, %100 : vector<2x128xf32>
        %cst_47 = arith.constant 0.000000e+00 : f32
        %102 = vector.broadcast %cst_47 : f32 to vector<2x128xf32>
        %103 = arith.maximumf %101, %102 : vector<2x128xf32>
        %104 = vector.broadcast %58 : f32 to vector<2x128xf32>
        %105 = arith.minimumf %10, %104 : vector<2x128xf32>
        %106 = vector.broadcast %50 : f32 to vector<2x128xf32>
        %107 = arith.maximumf %6, %106 : vector<2x128xf32>
        %108 = arith.subf %105, %107 : vector<2x128xf32>
        %cst_48 = arith.constant 0.000000e+00 : f32
        %109 = vector.broadcast %cst_48 : f32 to vector<2x128xf32>
        %110 = arith.maximumf %108, %109 : vector<2x128xf32>
        %111 = arith.mulf %103, %110 : vector<2x128xf32>
        %112 = vector.broadcast %96 : f32 to vector<2x128xf32>
        %113 = arith.addf %15, %112 : vector<2x128xf32>
        %114 = arith.subf %113, %111 : vector<2x128xf32>
        %cst_49 = arith.constant 9.99999971E-10 : f32
        %115 = vector.broadcast %cst_49 : f32 to vector<2x128xf32>
        %116 = arith.addf %114, %115 : vector<2x128xf32>
        %117 = arith.divf %111, %116 : vector<2x128xf32>
        %cst_50 = arith.constant 1.000000e-07 : f32
        %118 = vector.broadcast %cst_50 : f32 to vector<2x128xf32>
        %119 = arith.addf %117, %118 : vector<2x128xf32>
        %120 = math.log %119 : vector<2x128xf32>
        %cst_51 = arith.constant 0.000000e+00 : f32
        %121 = vector.broadcast %cst_51 : f32 to vector<2x128xf32>
        %122 = arith.subf %121, %120 : vector<2x128xf32>
        %cst_52 = arith.constant 3.000000e+00 : f32
        %123 = vector.broadcast %cst_52 : f32 to vector<2x128xf32>
        %124 = arith.mulf %123, %122 : vector<2x128xf32>
        %125 = arith.addf %22, %124 : vector<2x128xf32>
        %126 = arith.index_cast %60 : i32 to index
        %c0_53 = arith.constant 0 : index
        %c0_54 = arith.constant 0 : index
        %127 = vector.load %arg11[%126, %c0_53, %c0_54] : memref<8x2x128xf32, #tpu.memory_space<vmem>>, vector<1x2x128xf32>
        %128 = vector.shape_cast %127 : vector<1x2x128xf32> to vector<2x128xf32>
        %129 = arith.addf %125, %128 : vector<2x128xf32>
        %130 = arith.select %91, %129, %125 : vector<2x128xi1>, vector<2x128xf32>
        %cst_55 = arith.constant 1.000000e+05 : f32
        %131 = vector.broadcast %cst_55 : f32 to vector<2x128xf32>
        %132 = arith.addf %130, %131 : vector<2x128xf32>
        %133 = arith.select %92, %130, %132 : vector<2x128xi1>, vector<2x128xf32>
        %c0_56 = arith.constant 0 : index
        %134 = arith.index_cast %30 : i32 to index
        %c0_57 = arith.constant 0 : index
        %c0_58 = arith.constant 0 : index
        %135 = vector.load %arg8[%c0_56, %134, %c0_57, %c0_58] : memref<1x4x2x128xf32, #tpu.memory_space<vmem>>, vector<1x1x2x128xf32>
        %136 = vector.shape_cast %135 : vector<1x1x2x128xf32> to vector<2x128xf32>
        %137 = vector.shape_cast %133 : vector<2x128xf32> to vector<1x1x2x128xf32>
        tpu.vector_store %arg8[%c0_56, %134, %c0_57, %c0_58], %137 {strides = array<i32>} : memref<1x4x2x128xf32, #tpu.memory_space<vmem>>, vector<1x1x2x128xf32>,
        %cst_59 = arith.constant -1.000000e+00 : f32
        %138 = vector.broadcast %cst_59 : f32 to vector<2x128xf32>
        %139 = arith.select %91, %117, %138 : vector<2x128xi1>, vector<2x128xf32>
        %cst_60 = arith.constant 0.000000e+00 : f32
        %cst_61 = arith.constant 1.000000e+01 : f32
        %c0_i32_62 = arith.constant 0 : i32
        %c10_i32 = arith.constant 10 : i32
        %140 = arith.addi %c0_i32_62, %c10_i32 : i32
        %c1_i32_63 = arith.constant 1 : i32
        %141:3 = scf.for %arg13 = %c0_i32_62 to %140 step %c1_i32_63 iter_args(%arg14 = %139, %arg15 = %cst_60, %arg16 = %cst_61) -> (vector<2x128xf32>, f32, f32)  : i32 {
          %154 = vector.shape_cast %arg14 : vector<2x128xf32> to vector<1x2x128xf32>
          %cst_72 = arith.constant dense<0xFF800000> : vector<1xf32>
          %155 = vector.multi_reduction <maximumf>, %154, %cst_72 [1, 2] : vector<1x2x128xf32> to vector<1xf32>
          %156 = vector.shape_cast %155 : vector<1xf32> to vector<1x1x1xf32>
          %157 = vector.extract %156[0, 0, 0] : f32 from vector<1x1x1xf32>
          %158 = vector.broadcast %157 : f32 to vector<2x128xf32>
          %159 = arith.cmpf oeq, %arg14, %158 : vector<2x128xf32>
          %160 = arith.extui %159 : vector<2x128xi1> to vector<2x128xi32>
          %161 = arith.sitofp %160 : vector<2x128xi32> to vector<2x128xf32>
          %162 = vector.shape_cast %161 : vector<2x128xf32> to vector<1x2x128xf32>
          %cst_73 = arith.constant dense<0.000000e+00> : vector<1xf32>
          %163 = vector.multi_reduction <add>, %162, %cst_73 [1, 2] : vector<1x2x128xf32> to vector<1xf32>
          %164 = vector.shape_cast %163 : vector<1xf32> to vector<1x1x1xf32>
          %165 = vector.extract %164[0, 0, 0] : f32 from vector<1x1x1xf32>
          %166 = arith.minimumf %165, %arg16 : f32
          %cst_74 = arith.constant 0.000000e+00 : f32
          %167 = arith.cmpf oge, %157, %cst_74 : f32
          %168 = arith.mulf %157, %166 : f32
          %cst_75 = arith.constant 0.000000e+00 : f32
          %169 = arith.select %167, %168, %cst_75 : f32
          %170 = arith.addf %arg15, %169 : f32
          %cst_76 = arith.constant 0.000000e+00 : f32
          %171 = arith.select %167, %166, %cst_76 : f32
          %172 = arith.subf %arg16, %171 : f32
          %cst_77 = arith.constant -1.000000e+00 : f32
          %173 = vector.broadcast %cst_77 : f32 to vector<2x128xf32>
          %174 = arith.select %159, %173, %arg14 : vector<2x128xi1>, vector<2x128xf32>
          scf.yield %174, %170, %172 : vector<2x128xf32>, f32, f32
        }
        %c0_64 = arith.constant 0 : index
        %c0_65 = arith.constant 0 : index
        %c0_66 = arith.constant 0 : index
        %c0_67 = arith.constant 0 : index
        %142 = vector.load %arg9[%c0_64, %c0_65, %c0_66, %c0_67] : memref<1x1x4x128xf32, #tpu.memory_space<vmem>>, vector<1x1x4x128xf32>
        %143 = vector.shape_cast %142 : vector<1x1x4x128xf32> to vector<4x128xf32>
        %144 = vector.broadcast %30 : i32 to vector<4x128xi32>
        %145 = arith.cmpi eq, %23, %144 : vector<4x128xi32>
        %146 = arith.extui %145 : vector<4x128xi1> to vector<4x128xi32>
        %147 = arith.sitofp %146 : vector<4x128xi32> to vector<4x128xf32>
        %148 = vector.broadcast %141#1 : f32 to vector<4x128xf32>
        %149 = arith.mulf %147, %148 : vector<4x128xf32>
        %150 = arith.addf %143, %149 : vector<4x128xf32>
        %c0_68 = arith.constant 0 : index
        %c0_69 = arith.constant 0 : index
        %c0_70 = arith.constant 0 : index
        %c0_71 = arith.constant 0 : index
        %151 = vector.load %arg9[%c0_68, %c0_69, %c0_70, %c0_71] : memref<1x1x4x128xf32, #tpu.memory_space<vmem>>, vector<1x1x4x128xf32>
        %152 = vector.shape_cast %151 : vector<1x1x4x128xf32> to vector<4x128xf32>
        %153 = vector.shape_cast %150 : vector<4x128xf32> to vector<1x1x4x128xf32>
        tpu.vector_store %arg9[%c0_68, %c0_69, %c0_70, %c0_71], %153 {strides = array<i32>} : memref<1x1x4x128xf32, #tpu.memory_space<vmem>>, vector<1x1x4x128xf32>,
      } else {
      }
      %true = arith.constant true
      %40 = arith.xori %37, %true : i1
      %41 = arith.extui %40 : i1 to i32
      %c0_i32_37 = arith.constant 0 : i32
      %42 = arith.cmpi ne, %41, %c0_i32_37 : i32
      scf.if %42 {
        %cst_38 = arith.constant 1.000000e+06 : f32
        %43 = vector.broadcast %cst_38 : f32 to vector<2x128xf32>
        %c0_39 = arith.constant 0 : index
        %44 = arith.index_cast %30 : i32 to index
        %c0_40 = arith.constant 0 : index
        %c0_41 = arith.constant 0 : index
        %45 = vector.load %arg8[%c0_39, %44, %c0_40, %c0_41] : memref<1x4x2x128xf32, #tpu.memory_space<vmem>>, vector<1x1x2x128xf32>
        %46 = vector.shape_cast %45 : vector<1x1x2x128xf32> to vector<2x128xf32>
        %47 = vector.shape_cast %43 : vector<2x128xf32> to vector<1x1x2x128xf32>
        tpu.vector_store %arg8[%c0_39, %44, %c0_40, %c0_41], %47 {strides = array<i32>} : memref<1x4x2x128xf32, #tpu.memory_space<vmem>>, vector<1x1x2x128xf32>,
      } else {
      }
    }
    %c4_i32_30 = arith.constant 4 : i32
    return
  }
  func.func @transform_0(%arg0: i32, %arg1: i32) -> i32 {
    %c0_i32 = arith.constant 0 : i32
    %c0_i32_0 = arith.constant 0 : i32
    return %c0_i32 : i32
  }
  func.func @transform_1(%arg0: i32, %arg1: i32) -> i32 {
    %c0_i32 = arith.constant 0 : i32
    %c0_i32_0 = arith.constant 0 : i32
    return %c0_i32 : i32
  }
  func.func @transform_2(%arg0: i32, %arg1: i32) -> i32 {
    %c0_i32 = arith.constant 0 : i32
    %c0_i32_0 = arith.constant 0 : i32
    return %c0_i32 : i32
  }
  func.func @transform_3(%arg0: i32, %arg1: i32) -> (i32, i32, i32, i32) {
    %c0_i32 = arith.constant 0 : i32
    %c0_i32_0 = arith.constant 0 : i32
    %c0_i32_1 = arith.constant 0 : i32
    %c0_i32_2 = arith.constant 0 : i32
    return %arg0, %c0_i32, %c0_i32_0, %c0_i32_1 : i32, i32, i32, i32
  }
  func.func @transform_4(%arg0: i32, %arg1: i32) -> (i32, i32, i32, i32) {
    %c0_i32 = arith.constant 0 : i32
    %c0_i32_0 = arith.constant 0 : i32
    %c0_i32_1 = arith.constant 0 : i32
    %c0_i32_2 = arith.constant 0 : i32
    return %arg0, %c0_i32, %c0_i32_0, %c0_i32_1 : i32, i32, i32, i32
  }
  func.func @transform_5(%arg0: i32, %arg1: i32) -> (i32, i32, i32) {
    %c0_i32 = arith.constant 0 : i32
    %c0_i32_0 = arith.constant 0 : i32
    %c0_i32_1 = arith.constant 0 : i32
    %c0_i32_2 = arith.constant 0 : i32
    return %c0_i32, %c0_i32_0, %c0_i32_1 : i32, i32, i32
  }
  func.func @transform_6(%arg0: i32, %arg1: i32) -> (i32, i32, i32, i32) {
    %c0_i32 = arith.constant 0 : i32
    %c0_i32_0 = arith.constant 0 : i32
    %c0_i32_1 = arith.constant 0 : i32
    return %arg0, %arg1, %c0_i32, %c0_i32_0 : i32, i32, i32, i32
  }
  func.func @transform_7(%arg0: i32, %arg1: i32) -> (i32, i32, i32, i32) {
    %c0_i32 = arith.constant 0 : i32
    %c0_i32_0 = arith.constant 0 : i32
    %c0_i32_1 = arith.constant 0 : i32
    return %arg0, %arg1, %c0_i32, %c0_i32_0 : i32, i32, i32, i32
  }
}

module attributes {stable_mosaic.version = 11 : i64} {
  func.func @_loss_kernel(%arg0: i32, %arg1: memref<32xf32, #tpu.memory_space<smem>>, %arg2: memref<8xi32, #tpu.memory_space<smem>>, %arg3: memref<8xi32, #tpu.memory_space<smem>>, %arg4: memref<8xf32, #tpu.memory_space<smem>>, %arg5: memref<1x4x2x128xf32, #tpu.memory_space<vmem>>, %arg6: memref<1x8x2x128xf32, #tpu.memory_space<vmem>>, %arg7: memref<1x2x128xf32, #tpu.memory_space<vmem>>, %arg8: memref<1x2x128xf32, #tpu.memory_space<vmem>>, %arg9: memref<1x4x2x128xbf16, #tpu.memory_space<vmem>>, %arg10: memref<2x128xf32, #tpu.memory_space<vmem>>, %arg11: memref<1x8x128xf32, #tpu.memory_space<vmem>>, %arg12: memref<1x8x128xf32, #tpu.memory_space<vmem>>, %arg13: memref<1x8x128xf32, #tpu.memory_space<vmem>>, %arg14: memref<8x2x128xf32, #tpu.memory_space<vmem>>, %arg15: memref<2x128xf32, #tpu.memory_space<vmem>>, %arg16: memref<2x128xf32, #tpu.memory_space<vmem>>, %arg17: memref<2x128xf32, #tpu.memory_space<vmem>>) attributes {dimension_semantics = [#tpu.dimension_semantics<parallel>], iteration_bounds = array<i64: 2>, scalar_prefetch = 0 : i64, scratch_operands = 4 : i64, tpu.core_type = #tpu.core_type<tc>, window_params = [{transform_indices = @transform_0, window_bounds = array<i64: 32>}, {transform_indices = @transform_1, window_bounds = array<i64: 8>}, {transform_indices = @transform_2, window_bounds = array<i64: 8>}, {transform_indices = @transform_3, window_bounds = array<i64: 8>}, {transform_indices = @transform_4, window_bounds = array<i64: 1, 4, 2, 128>}, {transform_indices = @transform_5, window_bounds = array<i64: 1, 8, 2, 128>}, {transform_indices = @transform_6, window_bounds = array<i64: 1, 2, 128>}, {transform_indices = @transform_7, window_bounds = array<i64: 1, 2, 128>}, {transform_indices = @transform_8, window_bounds = array<i64: 1, 4, 2, 128>}, {pipeline_mode = #tpu.pipeline_mode<synchronous>, transform_indices = @transform_9, window_bounds = array<i64: 2, 128>}, {transform_indices = @transform_10, window_bounds = array<i64: 1, 8, 128>}, {transform_indices = @transform_11, window_bounds = array<i64: 1, 8, 128>}, {transform_indices = @transform_12, window_bounds = array<i64: 1, 8, 128>}]} {
    %c0 = arith.constant 0 : index
    %c0_0 = arith.constant 0 : index
    %c0_1 = arith.constant 0 : index
    %c0_2 = arith.constant 0 : index
    %0 = vector.load %arg5[%c0, %c0_0, %c0_1, %c0_2] : memref<1x4x2x128xf32, #tpu.memory_space<vmem>>, vector<1x1x2x128xf32>
    %1 = vector.shape_cast %0 : vector<1x1x2x128xf32> to vector<2x128xf32>
    %c0_3 = arith.constant 0 : index
    %c1 = arith.constant 1 : index
    %c0_4 = arith.constant 0 : index
    %c0_5 = arith.constant 0 : index
    %2 = vector.load %arg5[%c0_3, %c1, %c0_4, %c0_5] : memref<1x4x2x128xf32, #tpu.memory_space<vmem>>, vector<1x1x2x128xf32>
    %3 = vector.shape_cast %2 : vector<1x1x2x128xf32> to vector<2x128xf32>
    %c0_6 = arith.constant 0 : index
    %c2 = arith.constant 2 : index
    %c0_7 = arith.constant 0 : index
    %c0_8 = arith.constant 0 : index
    %4 = vector.load %arg5[%c0_6, %c2, %c0_7, %c0_8] : memref<1x4x2x128xf32, #tpu.memory_space<vmem>>, vector<1x1x2x128xf32>
    %5 = vector.shape_cast %4 : vector<1x1x2x128xf32> to vector<2x128xf32>
    %c0_9 = arith.constant 0 : index
    %c3 = arith.constant 3 : index
    %c0_10 = arith.constant 0 : index
    %c0_11 = arith.constant 0 : index
    %6 = vector.load %arg5[%c0_9, %c3, %c0_10, %c0_11] : memref<1x4x2x128xf32, #tpu.memory_space<vmem>>, vector<1x1x2x128xf32>
    %7 = vector.shape_cast %6 : vector<1x1x2x128xf32> to vector<2x128xf32>
    %8 = arith.subf %5, %1 : vector<2x128xf32>
    %9 = arith.subf %7, %3 : vector<2x128xf32>
    %cst = arith.constant 9.99999971E-10 : f32
    %10 = vector.broadcast %cst : f32 to vector<2x128xf32>
    %11 = arith.addf %9, %10 : vector<2x128xf32>
    %12 = arith.mulf %8, %11 : vector<2x128xf32>
    %13 = arith.addf %1, %5 : vector<2x128xf32>
    %14 = arith.addf %3, %7 : vector<2x128xf32>
    %c0_12 = arith.constant 0 : index
    %c0_13 = arith.constant 0 : index
    %c0_14 = arith.constant 0 : index
    %15 = vector.load %arg8[%c0_12, %c0_13, %c0_14] : memref<1x2x128xf32, #tpu.memory_space<vmem>>, vector<1x2x128xf32>
    %16 = vector.shape_cast %15 : vector<1x2x128xf32> to vector<2x128xf32>
    %cst_15 = arith.constant 0.000000e+00 : f32
    %17 = vector.broadcast %cst_15 : f32 to vector<2x128xf32>
    %c0_i32 = arith.constant 0 : i32
    %c8_i32 = arith.constant 8 : i32
    %18 = arith.addi %c0_i32, %c8_i32 : i32
    %c1_i32 = arith.constant 1 : i32
    %19 = scf.for %arg18 = %c0_i32 to %18 step %c1_i32 iter_args(%arg19 = %17) -> (vector<2x128xf32>)  : i32 {
      %c0_61 = arith.constant 0 : index
      %83 = arith.index_cast %arg18 : i32 to index
      %c0_62 = arith.constant 0 : index
      %c0_63 = arith.constant 0 : index
      %84 = vector.load %arg6[%c0_61, %83, %c0_62, %c0_63] : memref<1x8x2x128xf32, #tpu.memory_space<vmem>>, vector<1x1x2x128xf32>
      %85 = vector.shape_cast %84 : vector<1x1x2x128xf32> to vector<2x128xf32>
      %cst_64 = arith.constant 1.000000e+00 : f32
      %86 = vector.broadcast %cst_64 : f32 to vector<2x128xf32>
      %87 = arith.subf %86, %85 : vector<2x128xf32>
      %cst_65 = arith.constant 1.000000e-07 : f32
      %88 = vector.broadcast %cst_65 : f32 to vector<2x128xf32>
      %89 = arith.addf %87, %88 : vector<2x128xf32>
      %90 = math.log %89 : vector<2x128xf32>
      %cst_66 = arith.constant 1.000000e-07 : f32
      %91 = vector.broadcast %cst_66 : f32 to vector<2x128xf32>
      %92 = arith.addf %85, %91 : vector<2x128xf32>
      %93 = math.log %92 : vector<2x128xf32>
      %94 = arith.subf %90, %93 : vector<2x128xf32>
      %95 = arith.index_cast %arg18 : i32 to index
      %c0_67 = arith.constant 0 : index
      %c0_68 = arith.constant 0 : index
      %96 = vector.load %arg14[%95, %c0_67, %c0_68] : memref<8x2x128xf32, #tpu.memory_space<vmem>>, vector<1x2x128xf32>
      %97 = vector.shape_cast %96 : vector<1x2x128xf32> to vector<2x128xf32>
      %98 = vector.shape_cast %94 : vector<2x128xf32> to vector<1x2x128xf32>
      tpu.vector_store %arg14[%95, %c0_67, %c0_68], %98 {strides = array<i32>} : memref<8x2x128xf32, #tpu.memory_space<vmem>>, vector<1x2x128xf32>,
      %99 = arith.subf %arg19, %90 : vector<2x128xf32>
      scf.yield %99 : vector<2x128xf32>
    }
    %c8_i32_16 = arith.constant 8 : i32
    %cst_17 = arith.constant 0.000000e+00 : f32
    %20 = vector.broadcast %cst_17 : f32 to vector<2x128xf32>
    %c0_18 = arith.constant 0 : index
    %c0_19 = arith.constant 0 : index
    %21 = vector.load %arg15[%c0_18, %c0_19] : memref<2x128xf32, #tpu.memory_space<vmem>>, vector<2x128xf32>
    tpu.vector_store %arg15[%c0_18, %c0_19], %20 {strides = array<i32>} : memref<2x128xf32, #tpu.memory_space<vmem>>, vector<2x128xf32>,
    %cst_20 = arith.constant 0.000000e+00 : f32
    %22 = vector.broadcast %cst_20 : f32 to vector<2x128xf32>
    %c0_21 = arith.constant 0 : index
    %c0_22 = arith.constant 0 : index
    %23 = vector.load %arg16[%c0_21, %c0_22] : memref<2x128xf32, #tpu.memory_space<vmem>>, vector<2x128xf32>
    tpu.vector_store %arg16[%c0_21, %c0_22], %22 {strides = array<i32>} : memref<2x128xf32, #tpu.memory_space<vmem>>, vector<2x128xf32>,
    %cst_23 = arith.constant 0.000000e+00 : f32
    %24 = vector.broadcast %cst_23 : f32 to vector<2x128xf32>
    %c0_24 = arith.constant 0 : index
    %c0_25 = arith.constant 0 : index
    %25 = vector.load %arg17[%c0_24, %c0_25] : memref<2x128xf32, #tpu.memory_space<vmem>>, vector<2x128xf32>
    tpu.vector_store %arg17[%c0_24, %c0_25], %24 {strides = array<i32>} : memref<2x128xf32, #tpu.memory_space<vmem>>, vector<2x128xf32>,
    %c0_i32_26 = arith.constant 0 : i32
    %c4_i32 = arith.constant 4 : i32
    %26 = arith.addi %c0_i32_26, %c4_i32 : i32
    %c1_i32_27 = arith.constant 1 : i32
    scf.for %arg18 = %c0_i32_26 to %26 step %c1_i32_27  : i32 {
      %c1_i32_61 = arith.constant 1 : i32
      %83 = arith.muli %arg18, %c1_i32_61 : i32
      %c0_i32_62 = arith.constant 0 : i32
      %84 = arith.addi %c0_i32_62, %83 : i32
      %c4_i32_63 = arith.constant 4 : i32
      %85 = arith.muli %arg0, %c4_i32_63 : i32
      %86 = arith.addi %85, %84 : i32
      %87 = arith.index_cast %86 : i32 to index
      %88 = memref.load %arg3[%87] : memref<8xi32, #tpu.memory_space<smem>>
      %c0_i32_64 = arith.constant 0 : i32
      %89 = arith.cmpi sgt, %88, %c0_i32_64 : i32
      %90 = arith.extui %89 : i1 to i32
      %c0_i32_65 = arith.constant 0 : i32
      %91 = arith.cmpi ne, %90, %c0_i32_65 : i32
      scf.if %91 {
        %c4_i32_66 = arith.constant 4 : i32
        %92 = arith.muli %c4_i32_66, %86 : i32
        %c0_i32_67 = arith.constant 0 : i32
        %93 = arith.addi %92, %c0_i32_67 : i32
        %94 = arith.index_cast %93 : i32 to index
        %95 = memref.load %arg1[%94] : memref<32xf32, #tpu.memory_space<smem>>
        %c4_i32_68 = arith.constant 4 : i32
        %96 = arith.muli %c4_i32_68, %86 : i32
        %c1_i32_69 = arith.constant 1 : i32
        %97 = arith.addi %96, %c1_i32_69 : i32
        %98 = arith.index_cast %97 : i32 to index
        %99 = memref.load %arg1[%98] : memref<32xf32, #tpu.memory_space<smem>>
        %c4_i32_70 = arith.constant 4 : i32
        %100 = arith.muli %c4_i32_70, %86 : i32
        %c2_i32 = arith.constant 2 : i32
        %101 = arith.addi %100, %c2_i32 : i32
        %102 = arith.index_cast %101 : i32 to index
        %103 = memref.load %arg1[%102] : memref<32xf32, #tpu.memory_space<smem>>
        %c4_i32_71 = arith.constant 4 : i32
        %104 = arith.muli %c4_i32_71, %86 : i32
        %c3_i32 = arith.constant 3 : i32
        %105 = arith.addi %104, %c3_i32 : i32
        %106 = arith.index_cast %105 : i32 to index
        %107 = memref.load %arg1[%106] : memref<32xf32, #tpu.memory_space<smem>>
        %108 = arith.index_cast %86 : i32 to index
        %109 = memref.load %arg2[%108] : memref<8xi32, #tpu.memory_space<smem>>
        %110 = arith.index_cast %86 : i32 to index
        %111 = memref.load %arg4[%110] : memref<8xf32, #tpu.memory_space<smem>>
        %c0_72 = arith.constant 0 : index
        %112 = arith.index_cast %84 : i32 to index
        %c0_73 = arith.constant 0 : index
        %c0_74 = arith.constant 0 : index
        %113 = vector.load %arg9[%c0_72, %112, %c0_73, %c0_74] : memref<1x4x2x128xbf16, #tpu.memory_space<vmem>>, vector<1x1x2x128xbf16>
        %114 = vector.shape_cast %113 : vector<1x1x2x128xbf16> to vector<2x128xbf16>
        %115 = arith.extf %114 : vector<2x128xbf16> to vector<2x128xf32>
        %116 = arith.subf %103, %95 : f32
        %117 = arith.subf %107, %99 : f32
        %cst_75 = arith.constant 9.99999971E-10 : f32
        %118 = arith.addf %117, %cst_75 : f32
        %119 = vector.broadcast %103 : f32 to vector<2x128xf32>
        %120 = arith.minimumf %5, %119 : vector<2x128xf32>
        %121 = vector.broadcast %95 : f32 to vector<2x128xf32>
        %122 = arith.maximumf %1, %121 : vector<2x128xf32>
        %123 = arith.subf %120, %122 : vector<2x128xf32>
        %cst_76 = arith.constant 0.000000e+00 : f32
        %124 = vector.broadcast %cst_76 : f32 to vector<2x128xf32>
        %125 = arith.maximumf %123, %124 : vector<2x128xf32>
        %126 = vector.broadcast %107 : f32 to vector<2x128xf32>
        %127 = arith.minimumf %7, %126 : vector<2x128xf32>
        %128 = vector.broadcast %99 : f32 to vector<2x128xf32>
        %129 = arith.maximumf %3, %128 : vector<2x128xf32>
        %130 = arith.subf %127, %129 : vector<2x128xf32>
        %cst_77 = arith.constant 0.000000e+00 : f32
        %131 = vector.broadcast %cst_77 : f32 to vector<2x128xf32>
        %132 = arith.maximumf %130, %131 : vector<2x128xf32>
        %133 = arith.mulf %125, %132 : vector<2x128xf32>
        %134 = arith.mulf %116, %118 : f32
        %135 = vector.broadcast %134 : f32 to vector<2x128xf32>
        %136 = arith.addf %12, %135 : vector<2x128xf32>
        %137 = arith.subf %136, %133 : vector<2x128xf32>
        %cst_78 = arith.constant 9.99999971E-10 : f32
        %138 = vector.broadcast %cst_78 : f32 to vector<2x128xf32>
        %139 = arith.addf %137, %138 : vector<2x128xf32>
        %140 = arith.divf %133, %139 : vector<2x128xf32>
        %141 = vector.broadcast %103 : f32 to vector<2x128xf32>
        %142 = arith.maximumf %5, %141 : vector<2x128xf32>
        %143 = vector.broadcast %95 : f32 to vector<2x128xf32>
        %144 = arith.minimumf %1, %143 : vector<2x128xf32>
        %145 = arith.subf %142, %144 : vector<2x128xf32>
        %146 = vector.broadcast %107 : f32 to vector<2x128xf32>
        %147 = arith.maximumf %7, %146 : vector<2x128xf32>
        %148 = vector.broadcast %99 : f32 to vector<2x128xf32>
        %149 = arith.minimumf %3, %148 : vector<2x128xf32>
        %150 = arith.subf %147, %149 : vector<2x128xf32>
        %151 = arith.mulf %145, %145 : vector<2x128xf32>
        %152 = arith.mulf %150, %150 : vector<2x128xf32>
        %153 = arith.addf %151, %152 : vector<2x128xf32>
        %cst_79 = arith.constant 9.99999971E-10 : f32
        %154 = vector.broadcast %cst_79 : f32 to vector<2x128xf32>
        %155 = arith.addf %153, %154 : vector<2x128xf32>
        %156 = arith.addf %95, %103 : f32
        %157 = vector.broadcast %156 : f32 to vector<2x128xf32>
        %158 = arith.subf %157, %13 : vector<2x128xf32>
        %159 = arith.mulf %158, %158 : vector<2x128xf32>
        %160 = arith.addf %99, %107 : f32
        %161 = vector.broadcast %160 : f32 to vector<2x128xf32>
        %162 = arith.subf %161, %14 : vector<2x128xf32>
        %163 = arith.mulf %162, %162 : vector<2x128xf32>
        %164 = arith.addf %159, %163 : vector<2x128xf32>
        %cst_80 = arith.constant 2.500000e-01 : f32
        %165 = vector.broadcast %cst_80 : f32 to vector<2x128xf32>
        %166 = arith.mulf %164, %165 : vector<2x128xf32>
        %167 = vector.broadcast %111 : f32 to vector<2x128xf32>
        %168 = arith.subf %167, %16 : vector<2x128xf32>
        %169 = arith.mulf %168, %168 : vector<2x128xf32>
        %cst_81 = arith.constant 0.405284733 : f32
        %170 = vector.broadcast %cst_81 : f32 to vector<2x128xf32>
        %171 = arith.mulf %170, %169 : vector<2x128xf32>
        %172 = arith.subf %171, %140 : vector<2x128xf32>
        %cst_82 = arith.constant 1.000000e+00 : f32
        %173 = vector.broadcast %cst_82 : f32 to vector<2x128xf32>
        %174 = arith.addf %172, %173 : vector<2x128xf32>
        %175 = arith.divf %171, %174 : vector<2x128xf32>
        %176 = arith.divf %166, %155 : vector<2x128xf32>
        %177 = arith.mulf %171, %175 : vector<2x128xf32>
        %178 = arith.addf %176, %177 : vector<2x128xf32>
        %179 = arith.subf %140, %178 : vector<2x128xf32>
        %c0_83 = arith.constant 0 : index
        %c0_84 = arith.constant 0 : index
        %180 = vector.load %arg15[%c0_83, %c0_84] : memref<2x128xf32, #tpu.memory_space<vmem>>, vector<2x128xf32>
        %cst_85 = arith.constant 1.000000e+00 : f32
        %181 = vector.broadcast %cst_85 : f32 to vector<2x128xf32>
        %182 = arith.subf %181, %179 : vector<2x128xf32>
        %183 = arith.mulf %115, %182 : vector<2x128xf32>
        %184 = arith.addf %180, %183 : vector<2x128xf32>
        %c0_86 = arith.constant 0 : index
        %c0_87 = arith.constant 0 : index
        %185 = vector.load %arg15[%c0_86, %c0_87] : memref<2x128xf32, #tpu.memory_space<vmem>>, vector<2x128xf32>
        tpu.vector_store %arg15[%c0_86, %c0_87], %184 {strides = array<i32>} : memref<2x128xf32, #tpu.memory_space<vmem>>, vector<2x128xf32>,
        %c0_88 = arith.constant 0 : index
        %c0_89 = arith.constant 0 : index
        %186 = vector.load %arg16[%c0_88, %c0_89] : memref<2x128xf32, #tpu.memory_space<vmem>>, vector<2x128xf32>
        %187 = arith.index_cast %109 : i32 to index
        %c0_90 = arith.constant 0 : index
        %c0_91 = arith.constant 0 : index
        %188 = vector.load %arg14[%187, %c0_90, %c0_91] : memref<8x2x128xf32, #tpu.memory_space<vmem>>, vector<1x2x128xf32>
        %189 = vector.shape_cast %188 : vector<1x2x128xf32> to vector<2x128xf32>
        %190 = arith.addf %19, %189 : vector<2x128xf32>
        %191 = arith.mulf %115, %190 : vector<2x128xf32>
        %192 = arith.addf %186, %191 : vector<2x128xf32>
        %c0_92 = arith.constant 0 : index
        %c0_93 = arith.constant 0 : index
        %193 = vector.load %arg16[%c0_92, %c0_93] : memref<2x128xf32, #tpu.memory_space<vmem>>, vector<2x128xf32>
        tpu.vector_store %arg16[%c0_92, %c0_93], %192 {strides = array<i32>} : memref<2x128xf32, #tpu.memory_space<vmem>>, vector<2x128xf32>,
        %c0_94 = arith.constant 0 : index
        %c0_95 = arith.constant 0 : index
        %194 = vector.load %arg17[%c0_94, %c0_95] : memref<2x128xf32, #tpu.memory_space<vmem>>, vector<2x128xf32>
        %195 = arith.addf %194, %115 : vector<2x128xf32>
        %c0_96 = arith.constant 0 : index
        %c0_97 = arith.constant 0 : index
        %196 = vector.load %arg17[%c0_96, %c0_97] : memref<2x128xf32, #tpu.memory_space<vmem>>, vector<2x128xf32>
        tpu.vector_store %arg17[%c0_96, %c0_97], %195 {strides = array<i32>} : memref<2x128xf32, #tpu.memory_space<vmem>>, vector<2x128xf32>,
      } else {
      }
    }
    %c4_i32_28 = arith.constant 4 : i32
    %c0_29 = arith.constant 0 : index
    %c0_30 = arith.constant 0 : index
    %c0_31 = arith.constant 0 : index
    %27 = vector.load %arg7[%c0_29, %c0_30, %c0_31] : memref<1x2x128xf32, #tpu.memory_space<vmem>>, vector<1x2x128xf32>
    %28 = vector.shape_cast %27 : vector<1x2x128xf32> to vector<2x128xf32>
    %c0_32 = arith.constant 0 : index
    %c0_33 = arith.constant 0 : index
    %29 = vector.load %arg17[%c0_32, %c0_33] : memref<2x128xf32, #tpu.memory_space<vmem>>, vector<2x128xf32>
    %cst_34 = arith.constant 0.000000e+00 : f32
    %30 = vector.broadcast %cst_34 : f32 to vector<2x128xf32>
    %31 = arith.cmpf ogt, %29, %30 : vector<2x128xf32>
    %32 = arith.extui %31 : vector<2x128xi1> to vector<2x128xi32>
    %33 = arith.sitofp %32 : vector<2x128xi32> to vector<2x128xf32>
    %cst_35 = arith.constant 0.000000e+00 : f32
    %34 = vector.broadcast %cst_35 : f32 to vector<2x128xf32>
    %35 = arith.subf %34, %33 : vector<2x128xf32>
    %cst_36 = arith.constant 1.000000e-07 : f32
    %36 = vector.broadcast %cst_36 : f32 to vector<2x128xf32>
    %37 = arith.addf %28, %36 : vector<2x128xf32>
    %38 = math.log %37 : vector<2x128xf32>
    %39 = arith.mulf %35, %38 : vector<2x128xf32>
    %cst_37 = arith.constant 1.000000e+00 : f32
    %40 = vector.broadcast %cst_37 : f32 to vector<2x128xf32>
    %41 = arith.subf %40, %33 : vector<2x128xf32>
    %cst_38 = arith.constant 1.000000e+00 : f32
    %42 = vector.broadcast %cst_38 : f32 to vector<2x128xf32>
    %43 = arith.subf %42, %28 : vector<2x128xf32>
    %cst_39 = arith.constant 1.000000e-07 : f32
    %44 = vector.broadcast %cst_39 : f32 to vector<2x128xf32>
    %45 = arith.addf %43, %44 : vector<2x128xf32>
    %46 = math.log %45 : vector<2x128xf32>
    %47 = arith.mulf %41, %46 : vector<2x128xf32>
    %48 = arith.subf %39, %47 : vector<2x128xf32>
    %c0_40 = arith.constant 0 : index
    %c0_41 = arith.constant 0 : index
    %49 = vector.load %arg10[%c0_40, %c0_41] : memref<2x128xf32, #tpu.memory_space<vmem>>, vector<2x128xf32>
    %50 = arith.mulf %48, %49 : vector<2x128xf32>
    %cst_42 = arith.constant 0.000000e+00 : f32
    %51 = vector.broadcast %cst_42 : f32 to vector<8x128xf32>
    %c0_43 = arith.constant 0 : index
    %c0_44 = arith.constant 0 : index
    %52 = vector.load %arg15[%c0_43, %c0_44] : memref<2x128xf32, #tpu.memory_space<vmem>>, vector<2x128xf32>
    %53 = vector.shape_cast %52 : vector<2x128xf32> to vector<1x2x128xf32>
    %cst_45 = arith.constant dense<0.000000e+00> : vector<1xf32>
    %54 = vector.multi_reduction <add>, %53, %cst_45 [1, 2] : vector<1x2x128xf32> to vector<1xf32>
    %55 = vector.shape_cast %54 : vector<1xf32> to vector<1x1x1xf32>
    %56 = vector.extract %55[0, 0, 0] : f32 from vector<1x1x1xf32>
    %57 = vector.broadcast %56 : f32 to vector<8x128xf32>
    %58 = arith.addf %51, %57 : vector<8x128xf32>
    %c0_46 = arith.constant 0 : index
    %c0_47 = arith.constant 0 : index
    %c0_48 = arith.constant 0 : index
    %59 = vector.load %arg11[%c0_46, %c0_47, %c0_48] : memref<1x8x128xf32, #tpu.memory_space<vmem>>, vector<1x8x128xf32>
    %60 = vector.shape_cast %59 : vector<1x8x128xf32> to vector<8x128xf32>
    %61 = vector.shape_cast %58 : vector<8x128xf32> to vector<1x8x128xf32>
    tpu.vector_store %arg11[%c0_46, %c0_47, %c0_48], %61 {strides = array<i32>} : memref<1x8x128xf32, #tpu.memory_space<vmem>>, vector<1x8x128xf32>,
    %cst_49 = arith.constant 0.000000e+00 : f32
    %62 = vector.broadcast %cst_49 : f32 to vector<8x128xf32>
    %c0_50 = arith.constant 0 : index
    %c0_51 = arith.constant 0 : index
    %63 = vector.load %arg16[%c0_50, %c0_51] : memref<2x128xf32, #tpu.memory_space<vmem>>, vector<2x128xf32>
    %64 = vector.shape_cast %63 : vector<2x128xf32> to vector<1x2x128xf32>
    %cst_52 = arith.constant dense<0.000000e+00> : vector<1xf32>
    %65 = vector.multi_reduction <add>, %64, %cst_52 [1, 2] : vector<1x2x128xf32> to vector<1xf32>
    %66 = vector.shape_cast %65 : vector<1xf32> to vector<1x1x1xf32>
    %67 = vector.extract %66[0, 0, 0] : f32 from vector<1x1x1xf32>
    %68 = vector.broadcast %67 : f32 to vector<8x128xf32>
    %69 = arith.addf %62, %68 : vector<8x128xf32>
    %c0_53 = arith.constant 0 : index
    %c0_54 = arith.constant 0 : index
    %c0_55 = arith.constant 0 : index
    %70 = vector.load %arg12[%c0_53, %c0_54, %c0_55] : memref<1x8x128xf32, #tpu.memory_space<vmem>>, vector<1x8x128xf32>
    %71 = vector.shape_cast %70 : vector<1x8x128xf32> to vector<8x128xf32>
    %72 = vector.shape_cast %69 : vector<8x128xf32> to vector<1x8x128xf32>
    tpu.vector_store %arg12[%c0_53, %c0_54, %c0_55], %72 {strides = array<i32>} : memref<1x8x128xf32, #tpu.memory_space<vmem>>, vector<1x8x128xf32>,
    %cst_56 = arith.constant 0.000000e+00 : f32
    %73 = vector.broadcast %cst_56 : f32 to vector<8x128xf32>
    %74 = vector.shape_cast %50 : vector<2x128xf32> to vector<1x2x128xf32>
    %cst_57 = arith.constant dense<0.000000e+00> : vector<1xf32>
    %75 = vector.multi_reduction <add>, %74, %cst_57 [1, 2] : vector<1x2x128xf32> to vector<1xf32>
    %76 = vector.shape_cast %75 : vector<1xf32> to vector<1x1x1xf32>
    %77 = vector.extract %76[0, 0, 0] : f32 from vector<1x1x1xf32>
    %78 = vector.broadcast %77 : f32 to vector<8x128xf32>
    %79 = arith.addf %73, %78 : vector<8x128xf32>
    %c0_58 = arith.constant 0 : index
    %c0_59 = arith.constant 0 : index
    %c0_60 = arith.constant 0 : index
    %80 = vector.load %arg13[%c0_58, %c0_59, %c0_60] : memref<1x8x128xf32, #tpu.memory_space<vmem>>, vector<1x8x128xf32>
    %81 = vector.shape_cast %80 : vector<1x8x128xf32> to vector<8x128xf32>
    %82 = vector.shape_cast %79 : vector<8x128xf32> to vector<1x8x128xf32>
    tpu.vector_store %arg13[%c0_58, %c0_59, %c0_60], %82 {strides = array<i32>} : memref<1x8x128xf32, #tpu.memory_space<vmem>>, vector<1x8x128xf32>,
    return
  }
  func.func @transform_0(%arg0: i32) -> i32 {
    %c0_i32 = arith.constant 0 : i32
    %c0_i32_0 = arith.constant 0 : i32
    return %c0_i32 : i32
  }
  func.func @transform_1(%arg0: i32) -> i32 {
    %c0_i32 = arith.constant 0 : i32
    %c0_i32_0 = arith.constant 0 : i32
    return %c0_i32 : i32
  }
  func.func @transform_2(%arg0: i32) -> i32 {
    %c0_i32 = arith.constant 0 : i32
    %c0_i32_0 = arith.constant 0 : i32
    return %c0_i32 : i32
  }
  func.func @transform_3(%arg0: i32) -> i32 {
    %c0_i32 = arith.constant 0 : i32
    %c0_i32_0 = arith.constant 0 : i32
    return %c0_i32 : i32
  }
  func.func @transform_4(%arg0: i32) -> (i32, i32, i32, i32) {
    %c0_i32 = arith.constant 0 : i32
    %c0_i32_0 = arith.constant 0 : i32
    %c0_i32_1 = arith.constant 0 : i32
    %c0_i32_2 = arith.constant 0 : i32
    return %arg0, %c0_i32, %c0_i32_0, %c0_i32_1 : i32, i32, i32, i32
  }
  func.func @transform_5(%arg0: i32) -> (i32, i32, i32, i32) {
    %c0_i32 = arith.constant 0 : i32
    %c0_i32_0 = arith.constant 0 : i32
    %c0_i32_1 = arith.constant 0 : i32
    %c0_i32_2 = arith.constant 0 : i32
    return %arg0, %c0_i32, %c0_i32_0, %c0_i32_1 : i32, i32, i32, i32
  }
  func.func @transform_6(%arg0: i32) -> (i32, i32, i32) {
    %c0_i32 = arith.constant 0 : i32
    %c0_i32_0 = arith.constant 0 : i32
    %c0_i32_1 = arith.constant 0 : i32
    return %arg0, %c0_i32, %c0_i32_0 : i32, i32, i32
  }
  func.func @transform_7(%arg0: i32) -> (i32, i32, i32) {
    %c0_i32 = arith.constant 0 : i32
    %c0_i32_0 = arith.constant 0 : i32
    %c0_i32_1 = arith.constant 0 : i32
    return %arg0, %c0_i32, %c0_i32_0 : i32, i32, i32
  }
  func.func @transform_8(%arg0: i32) -> (i32, i32, i32, i32) {
    %c0_i32 = arith.constant 0 : i32
    %c0_i32_0 = arith.constant 0 : i32
    %c0_i32_1 = arith.constant 0 : i32
    %c0_i32_2 = arith.constant 0 : i32
    return %arg0, %c0_i32, %c0_i32_0, %c0_i32_1 : i32, i32, i32, i32
  }
  func.func @transform_9(%arg0: i32) -> (i32, i32) {
    %c0_i32 = arith.constant 0 : i32
    %c0_i32_0 = arith.constant 0 : i32
    %c0_i32_1 = arith.constant 0 : i32
    return %c0_i32, %c0_i32_0 : i32, i32
  }
  func.func @transform_10(%arg0: i32) -> (i32, i32, i32) {
    %c0_i32 = arith.constant 0 : i32
    %c0_i32_0 = arith.constant 0 : i32
    %c0_i32_1 = arith.constant 0 : i32
    return %arg0, %c0_i32, %c0_i32_0 : i32, i32, i32
  }
  func.func @transform_11(%arg0: i32) -> (i32, i32, i32) {
    %c0_i32 = arith.constant 0 : i32
    %c0_i32_0 = arith.constant 0 : i32
    %c0_i32_1 = arith.constant 0 : i32
    return %arg0, %c0_i32, %c0_i32_0 : i32, i32, i32
  }
  func.func @transform_12(%arg0: i32) -> (i32, i32, i32) {
    %c0_i32 = arith.constant 0 : i32
    %c0_i32_0 = arith.constant 0 : i32
    %c0_i32_1 = arith.constant 0 : i32
    return %arg0, %c0_i32, %c0_i32_0 : i32, i32, i32
  }
}

</mosaic_0001>

<bundles_post_ra>
// kernel: neg.2
= control target key start
LH: loop header
LB: loop body
LE: loop exit
PB: predicated region body
PF: predicated region fallthrough
CT: control target
= control target key end

     0   :  { %s72_s0 = inlined_call_operand.vmem [shape: f32[2,4,256], index: 0, kind: input, shape index: {}]   ;;  %s73_s1 = inlined_call_operand.vmem [shape: f32[2,4,256], index: 1, kind: output, shape index: {}]  }
   0x1   :  { %v2_v0 = vld [vmem:[%s72_s0] sm:$0xf]  ;;  %v32_v1 = vld [vmem:[%s72_s0 + $0x8] sm:$0xf]  ;;  %v34_v2 = vld [vmem:[%s72_s0 + $0x4] sm:$0xf] }
   0x2   :  { %v5_v3 = vxor.u32 2147483648, %v2_v0  ;;  %v12_v4 = vxor.u32 2147483648, %v32_v1  ;;  %v20_v5 = vxor.u32 2147483648, %v34_v2  ;;  %v36_v6 = vld [vmem:[%s72_s0 + $0xc] sm:$0xf] }
   0x3   :  { %v28_v7 = vxor.u32 2147483648, %v36_v6 }
   0x4   :  { %7 = vst [vmem:[%s73_s1] sm:$0xf] %v5_v3 }
   0x5   :  { %33 = vst [vmem:[%s73_s1 + $0x8] sm:$0xf] %v12_v4 }
   0x6   :  { %35 = vst [vmem:[%s73_s1 + $0x4] sm:$0xf] %v20_v5 }
   0x7   :  { %37 = vst [vmem:[%s73_s1 + $0xc] sm:$0xf] %v28_v7 }

// kernel: simota_forward.2
= control target key start
LH: loop header
LB: loop body
LE: loop exit
PB: predicated region body
PF: predicated region fallthrough
CT: control target
= control target key end

     0   :  { %13 = vsyncpa [#allocation5], 0  ;;  %s1406_s0 = inlined_call_operand.vmem [shape: f32[32], index: 0, kind: input, shape index: {}]   ;;  %s1407_s1 = inlined_call_operand.vmem [shape: s32[8], index: 1, kind: input, shape index: {}]   ;;  %s1408_s2 = inlined_call_operand.vmem [shape: s32[8], index: 2, kind: input, shape index: {}]   ;;  %s1409_s3 = inlined_call_operand.vmem [shape: f32[2,4,2,128], index: 3, kind: input, shape index: {}]   ;;  %s1410_s4 = inlined_call_operand.vmem [shape: f32[2,8,2,128], index: 4, kind: input, shape index: {}]   ;;  %s1411_s5 = inlined_call_operand.vmem [shape: f32[3,2,128], index: 5, kind: input, shape index: {}]   ;;  %s1412_s6 = inlined_call_operand.vmem [shape: f32[2,4,2,128], index: 6, kind: output, shape index: {0}]   ;;  %s1413_s7 = inlined_call_operand.vmem [shape: f32[2,1,4,128], index: 7, kind: output, shape index: {1}]  }
   0x1   :  { %14 = vsyncpa [#allocation7], 0  ;;  %s1134_s24 = smov 0   ;;  %s1136_s25 = smov 0  }
   0x2   :  { %s1138_s26 = smov 0  }
   0x3 LB: > { %s251_s29 = sshll.u32 %s1407_s1, 4  ;;  %s789_s30 = sadd.s32 4294967295, %s1057_s26   ;;  %s1057_s26 = sphi %s1138_s26, %s20_s26   ;;  %s1053_s25 = sphi %s1136_s25, %s1432_s25   ;;  %s1049_s24 = sphi %s1134_s24, %s1431_s24   ;;  %s252_s29 = int_to_ptr.vmem [resolvable:$true] %s251_s29 }
   0x4   : > { %p791_p0 = scmp.ge.s32.totalorder %s1057_s26, 1  ;;  %p229_p1 = scmp.lt.s32.totalorder %s1057_s26, 3 }
   0x5   : > { %p1155_p2 = scmp.eq.s32.totalorder %s789_s30, 0  ;;  %s32_s10 = sadd.s32 1, %s1053_s25 }
   0x6   : > { %p1159_p3 = pnand %p791_p0, %p229_p1  ;;  %s241_s13 = sshll.u32 %s1406_s0, 4  ;;  %s242_s13 = int_to_ptr.vmem [resolvable:$true] %s241_s13 }
   0x7   : > { %p34_p6 = scmp.ge.s32.totalorder %s32_s10, 2  ;;  %s261_s16 = sshll.u32 %s1408_s2, 4  ;;  %s262_s16 = int_to_ptr.vmem [resolvable:$true] %s261_s16 }
   0x8   : > { %p843_p4 = pneg %p1159_p3  ;;  %s1087_s17 = smov [#allocation6]  }
   0x9   : > { %s1434_s10 = smov (%p34_p6, %s32_s10), 0  ;;  %s1088_s18 = smov [#allocation4]  }
   0xa   : > { %p844_p5 = pnand %p1155_p2, %p843_p4  ;;  %s1089_s19 = smov [#allocation8]  }
   0xb   : > { %293 = sbr.rel (%p1159_p3) target bundleno = 523 (0x20b), region = 44 }
   0xc   : > { %849 = dma.vmem_to_smem (!%p844_p5), %s252_s29, 16, %s1087_s17, [#allocation7]  }
   0xd   : > { %846 = dma.vmem_to_smem (!%p844_p5), %s242_s13, 16, %s1088_s18, [#allocation5]  }
   0xe   : > { %852 = dma.vmem_to_smem (!%p844_p5), %s262_s16, 16, %s1089_s19, [#allocation7]  }
  0x10   : > { %1040 = dma.done.wait (%p1155_p2), [#allocation5], 16  }
  0x11   : > { %1042 = vsyncadd (%p1155_p2), [#allocation5], 4294967280 }
  0x12   : > { %1044 = dma.done.wait (%p1155_p2), [#allocation7], 32  }
  0x13   : > { %1046 = vsyncadd (%p1155_p2), [#allocation7], 4294967264 }
  0x14   : > { %310 = sfence }
  0x15   : > { %p353_p7 = scmp.lt.s32.totalorder %s1049_s24, 1  ;;  %v1059_v0 = vmov 0.0   ;;  %s1063_s17 = smov 0  }
  0x17   : > { %s354_s20 = scalar_select %p353_p7, %s1049_s24, 1 }
  0x19   : > { %s824_s21 = sshll.u32 %s354_s20, 3  ;;  %s825_s22 = sshll.u32 %s354_s20, 4 }
  0x1a   : > { %s1191_s28 = scalar_lea.vmem %s1409_s3, %s824_s21  ;;  %s1196_s9 = scalar_lea.vmem %s1410_s4, %s825_s22 }
  0x1b   : > { %s1201_s12 = scalar_lea.vmem %s1412_s6, %s824_s21  ;;  %s806_s13 = sshll.u32 %s354_s20, 2 }
  0x1c   : > { %s1206_s16 = scalar_lea.vmem %s1413_s7, %s806_s13 }
  0x1d LB: >> { %s807_s18 = sshll.u32 %s1065_s17, 1  ;;  %s389_s17 = sadd.s32 1, %s1065_s17   ;;  %s1065_s17 = sphi %s1063_s17, %s389_s17   ;;  %v1061_v0 = vphi %v1059_v0, %v1060_v0  }
  0x1e   : >> { %s392_s19 = scalar_lea.vmem %s1196_s9, %s807_s18  ;;  %s402_s20 = scalar_lea.vmem [#allocation3], %s807_s18 }
  0x1f   : >> { %v393_v1 = vld [vmem:[%s392_s19] sm:$0x3]  ;;  %p386_p8 = scmp.ge.s32.totalorder %s389_s17, 8  }
  0x20   : >> { %946 = vlog2.f32 %v393_v1  ;;  %v397_v2 = vsub.f32 1.0, %v393_v1  ;;  %v1210_v11 = vld [vmem:[%s1191_s28] sm:$0x3] (%p386_p8)  ;;  %v1213_v12 = vld [vmem:[%s1191_s28 + $0x2] sm:$0x3] (%p386_p8)  ;;  %v423_v13 = vlaneseq (%p386_p8)  ;;  %v1090_v22 = vmov (%p386_p8), 0.0  }
  0x21   : > { %v1216_v14 = vld [vmem:[%s1191_s28 + $0x4] sm:$0x3] (%p386_p8)  ;;  %v1219_v15 = vld [vmem:[%s1191_s28 + $0x6] sm:$0x3] (%p386_p8)  ;;  %v1224_v16 = vld [vmem:[%s1411_s5] sm:$0x3] (%p386_p8) }
  0x22   : >> { %948 = vlog2.f32 %v397_v2  ;;  %v413_v17 = vsub.f32 (%p386_p8), %v1216_v14, %v1210_v11  ;;  %v414_v18 = vsub.f32 (%p386_p8), %v1219_v15, %v1213_v12  ;;  %v1233_v19 = vld [vmem:[%s1411_s5 + $0x2] sm:$0x3] (%p386_p8)  ;;  %v1238_v20 = vld [vmem:[%s1411_s5 + $0x4] sm:$0x3] (%p386_p8)  ;;  %v1240_v21 = vshrl.u32 (%p386_p8), %v423_v13, 7  ;;  %425 = vst [vmem:[%s1206_s16] sm:$0xf] (%p386_p8), %v1090_v22 }
  0x23   : > { %s1247_s28 = smov (%p386_p8), 0  }
  0x24   : > { %v415_v23 = vadd.f32 (%p386_p8), 1e-09, %v414_v18 }
  0x26   : >> { %v947_v3 = vpop.eup %946  ;;  %v1243_v24 = vmul.f32 (%p386_p8), %v415_v23, %v413_v17 }
  0x27   : >> { %v395_v4 = vmul.f32 0.6931472, %v947_v3 }
  0x28   : >> { %v949_v5 = vpop.eup %948 }
  0x29   : >> { %v396_v6 = vmax.f32 %v395_v4, -100.0  ;;  %v399_v7 = vmul.f32 0.6931472, %v949_v5 }
  0x2b   : >> { %v400_v8 = vmax.f32 %v399_v7, -100.0  ;;  %388 = sbr.rel (!%p386_p8) target bundleno = 29 (0x1d), region = 145 }
  0x2d   : >> { %v401_v9 = vsub.f32 %v400_v8, %v396_v6  ;;  %v404_v10 = vsub.f32 %v1061_v0, %v400_v8  }
  0x2f   : >> { %403 = vst [vmem:[%s402_s20] sm:$0x3] %v401_v9  ;;  %v1060_v0 = vmov %v404_v10  }
  0x30   : > { %405 = vst [vmem:[#allocation2] sm:$0x3] %v404_v10 }
  0x37   : > { %v1245_v25 = vld [vmem:[#allocation2] sm:$0x3] }
  0x38 LB: >> { %s813_s9 = sshll.u32 %s1049_s24, 2  ;;  %s1069_s28 = sphi %s1247_s28, %s431_s28  }
  0x39   : >> { %s1254_s11 = sadd.s32 %s1069_s28, %s813_s9 }
  0x3a   : >> { %s1257_s8 = sld [smem:[#allocation8 + %s1254_s11]] }
  0x40   : >> { %p814_p9 = scmp.le.s32.totalorder %s1257_s8, 0 }
  0x41   : >> { %s815_s13 = sshll.u32 (!%p814_p9), %s1254_s11, 2 }
  0x42   : >> { %440 = sbr.rel (%p814_p9) target bundleno = 506 (0x1fa), region = 78  ;;  %s1261_s14 = sld [smem:[#allocation4 + %s815_s13]] (!%p814_p9) }
  0x43   : >> { %s443_s15 = sadd.s32 (!%p814_p9), 1, %s815_s13  ;;  %s445_s18 = sadd.s32 (!%p814_p9), 2, %s815_s13 }
  0x44   : >> { %s1263_s17 = sld [smem:[#allocation4 + %s443_s15]] (!%p814_p9)  ;;  %s447_s20 = sadd.s32 (!%p814_p9), 3, %s815_s13 }
  0x45   : >> { %s1265_s19 = sld [smem:[#allocation4 + %s445_s18]] (!%p814_p9) }
  0x46   : >> { %s1267_s21 = sld [smem:[#allocation4 + %s447_s20]] (!%p814_p9)  ;;  %s1352_s20 = smov (!%p814_p9), 10.0  }
  0x48   : >> { %v450_v26 = vstv %s1261_s14 }
  0x49   : >> { %v485_v28 = vmax.f32 %v1210_v11, %v450_v26  ;;  %vm1289_vm0 = vcmp.gt.f32.partialorder %v1224_v16, %v450_v26 }
  0x4a   : >> { %v452_v27 = vstv %s1263_s17 }
  0x4b   : >> { %v455_v29 = vstv %s1265_s19  ;;  %v489_v30 = vmax.f32 %v1213_v12, %v452_v27  ;;  %s480_s22 = ssub.f32 %s1265_s19, %s1261_s14  ;;  %vm1294_vm1 = vcmp.gt.f32.partialorder %v1233_v19, %v452_v27 }
  0x4c   : >> { %v458_v31 = vstv %s1267_s21  ;;  %v484_v32 = vmin.f32 %v1216_v14, %v455_v29  ;;  %s481_s23 = ssub.f32 %s1267_s21, %s1263_s17  ;;  %vm454_vm4 = vmand %vm1289_vm0, %vm1294_vm1  ;;  %vm456_vm5 = vcmp.lt.f32.partialorder %v1224_v16, %v455_v29 }
  0x4d   : >> { %v488_v33 = vmin.f32 %v1219_v15, %v458_v31  ;;  %s461_s27 = sadd.f32 %s1265_s19, %s1261_s14  ;;  %vm1308_vm10 = vmand %vm454_vm4, %vm456_vm5  ;;  %vm1313_vm11 = vcmp.lt.f32.partialorder %v1233_v19, %v458_v31  ;;  %s817_s19 = sshll.u32 %s1069_s28, 1 }
  0x4e   : >> { %v486_v34 = vsub.f32 %v484_v32, %v485_v28  ;;  %s482_s29 = sadd.f32 1e-09, %s481_s23  ;;  %vm460_vm0 = vmand %vm1308_vm10, %vm1313_vm11 }
  0x4f   : >> { %v490_v35 = vsub.f32 %v488_v33, %v489_v30  ;;  %s463_s30 = sadd.f32 %s1267_s21, %s1263_s17  ;;  %s462_s13 = smul.f32 0.5, %s461_s27 }
  0x50   : >> { %v487_v36 = vmax.f32 %v486_v34, 0.0  ;;  %s483_s9 = smul.f32 %s482_s29, %s480_s22  ;;  %s449_s14 = sld [smem:[#allocation6 + %s1254_s11]] }
  0x51   : >> { %v491_v37 = vmax.f32 %v490_v35, 0.0  ;;  %s464_s15 = smul.f32 0.5, %s463_s30  ;;  %v465_v42 = vstv %s462_s13  ;;  %s526_s11 = scalar_lea.vmem %s1201_s12, %s817_s19 }
  0x52   : >> { %v493_v39 = vstv %s483_s9  ;;  %v466_v45 = vsub.f32 %v465_v42, %v1238_v20  ;;  %v472_v49 = vadd.f32 %v1238_v20, %v465_v42  ;;  %s1354_s21 = smov 0.0   ;;  %s1356_s22 = smov 0  }
  0x53   : >> { %v492_v38 = vmul.f32 %v491_v37, %v487_v36  ;;  %v494_v40 = vadd.f32 %v493_v39, %v1243_v24  ;;  %v468_v43 = vstv %s464_s15 }
  0x54   : >> { %v469_v46 = vsub.f32 %v468_v43, %v1238_v20  ;;  %vm467_vm2 = vcmp.gt.f32.partialorder %v1224_v16, %v466_v45  ;;  %vm473_vm7 = vcmp.lt.f32.partialorder %v1224_v16, %v472_v49  ;;  %v475_v52 = vadd.f32 %v1238_v20, %v468_v43 }
  0x55   : >> { %v495_v41 = vsub.f32 %v494_v40, %v492_v38 }
  0x56   : >> { %vm470_vm3 = vcmp.gt.f32.partialorder %v1233_v19, %v469_v46  ;;  %vm476_vm13 = vcmp.lt.f32.partialorder %v1233_v19, %v475_v52  ;;  %s816_s17 = sshll.u32 %s449_s14, 1 }
  0x57   : >> { %v496_v44 = vadd.f32 1e-09, %v495_v41  ;;  %vm471_vm6 = vmand %vm467_vm2, %vm470_vm3  ;;  %s519_s18 = scalar_lea.vmem [#allocation3], %s816_s17 }
  0x58   : >> { %vm474_vm12 = vmand %vm471_vm6, %vm473_vm7  ;;  %v520_v8 = vld [vmem:[%s519_s18] sm:$0x3] }
  0x59   : >> { %950 = vrcp.f32 %v496_v44  ;;  %v508_v53 = vand.u32 2147483648, %v496_v44  ;;  %vm502_vm8 = vweird.f32 %v496_v44  ;;  %v506_v55 = vand.u32 2147483647, %v496_v44  ;;  %vm1322_vm1 = vmand %vm474_vm12, %vm476_vm13 }
  0x5a   : >> { %vm1333_vm2 = vmor %vm460_vm0, %vm1322_vm1 }
  0x5b   : >> { %v509_v59 = vor.u32 1.1754944e-38, %v508_v53  ;;  %vm507_vm15 = vcmp.eq.f32.partialorder %v506_v55, 8.507059e+37  ;;  %vm479_vm3 = vmand %vm460_vm0, %vm1322_vm1 }
  0x5f   : >> { %v951_v50 = vpop.eup %950 }
  0x60   : >> { %v498_v51 = vmul.f32 %v951_v50, %v496_v44  ;;  %vm503_vm9 = vweird.f32 %v951_v50 }
  0x61   : >> { %vm504_vm14 = vmor %vm502_vm8, %vm503_vm9 }
  0x62   : >> { %v499_v54 = vsub.f32 1.0, %v498_v51 }
  0x64   : >> { %v500_v58 = vmul.f32 %v951_v50, %v499_v54 }
  0x66   : >> { %v501_v60 = vadd.f32 %v951_v50, %v500_v58 }
  0x68   : >> { %v505_v62 = vsel %vm504_vm14, %v951_v50, %v501_v60 }
  0x69   : >> { %v510_v63 = vsel %vm507_vm15, %v509_v59, %v505_v62 }
  0x6a   : >> { %v511_v0 = vmul.f32 %v510_v63, %v492_v38 }
  0x6c   : >> { %v512_v2 = vadd.f32 1e-07, %v511_v0  ;;  %v528_v3 = vsel %vm1333_vm2, %v511_v0, -1.0  }
  0x6d   : >> { %v1079_v22 = vmov %v528_v3  }
  0x6e   : >> { %952 = vlog2.f32 %v512_v2 }
  0x74   : >> { %v953_v4 = vpop.eup %952 }
  0x75   : >> { %v514_v5 = vmul.f32 0.6931472, %v953_v4 }
  0x77   : >> { %v515_v6 = vsub.f32 0.0, %v514_v5 }
  0x79   : >> { %v516_v7 = vmul.f32 3.0, %v515_v6 }
  0x7b   : >> { %v517_v9 = vadd.f32 %v516_v7, %v1245_v25 }
  0x7d   : >> { %v521_v10 = vadd.f32 %v520_v8, %v517_v9 }
  0x7f   : >> { %v522_v13 = vsel %vm1333_vm2, %v521_v10, %v517_v9 }
  0x80   : >> { %v523_v17 = vadd.f32 100000.0, %v522_v13 }
  0x82   : >> { %v524_v18 = vsel %vm479_vm3, %v522_v13, %v523_v17 }
  0x83   : >> { %527 = vst [vmem:[%s526_s11] sm:$0x3] %v524_v18 }
  0x84 LB: >>> { %vm538_vm4 = vcmask 1041408   ;;  %v1091_v35 = vmov 0.0   ;;  %s534_s22 = sadd.s32 1, %s1085_s22   ;;  %s1085_s22 = sphi %s1356_s22, %s534_s22   ;;  %v1081_v22 = vphi %v1079_v22, %v570_v22   ;;  %s1077_s21 = sphi %s1354_s21, %s1430_s21   ;;  %s1073_s20 = sphi %s1352_s20, %s569_s20  }
  0x85   : >>> { %v539_v23 = vsel %vm538_vm4, %v1081_v22, -inf  ;;  %p531_p11 = scmp.ge.s32.totalorder %s534_s22, 10  }
  0x86   : >>> { %540 = vmax.xlane.f32.xlu0 %v539_v23  ;;  %v572_v45 = vstv (%p531_p11), %s1069_s28  ;;  %v571_v47 = vld [vmem:[%s1206_s16] sm:$0xf] (%p531_p11)  ;;  %v1092_v48 = vmov (%p531_p11), 0.0  }
  0x87   : >> { %vm573_vm6 = vcmp.eq.s32.totalorder (%p531_p11), %v1240_v21, %v572_v45 }
  0x88   : >> { %v819_v49 = vsel (%p531_p11), %vm573_vm6, 1.0, %v1092_v48 }
  0xf9   : >>> { %v541_v26 = vpop.xlane.xlu0 %540 }
  0xfa   : >>> { %v542_v27 = vrot.slane %v541_v26, 4 }
  0xfc   : >>> { %v543_v28 = vmax.f32 %v541_v26, %v542_v27 }
  0xfe   : >>> { %v544_v29 = vrot.slane %v543_v28, 2 }
 0x100   : >>> { %v545_v30 = vmax.f32 %v543_v28, %v544_v29 }
 0x102   : >>> { %v546_v31 = vrot.slane %v545_v30, 1 }
 0x104   : >>> { %v547_v32 = vmax.f32 %v545_v30, %v546_v31 }
 0x106   : >>> { %827 = vpush %v547_v32 }
 0x137   : >>> { %s828_s23 = spop %827 }
 0x138   : >>> { %v549_v33 = vstv %s828_s23  ;;  %p564_p10 = scmp.ge.f32.partialorder %s828_s23, 0.0 }
 0x139   : >>> { %vm1368_vm5 = vcmp.eq.f32.partialorder %v1081_v22, %v549_v33 }
 0x13a   : >>> { %v818_v36 = vsel %vm1368_vm5, 1.0, %v1091_v35  ;;  %v570_v22 = vsel %vm1368_vm5, -1.0, %v1081_v22  }
 0x13b   : >>> { %v553_v37 = vsel %vm538_vm4, %v818_v36, 0.0 }
 0x13c   : >>> { %554 = vadd.xlane.f32.xlu0 %v553_v37 }
 0x1af   : >>> { %v555_v38 = vpop.xlane.xlu0 %554 }
 0x1b0   : >>> { %v556_v39 = vrot.slane %v555_v38, 4 }
 0x1b2   : >>> { %v557_v40 = vadd.f32 %v556_v39, %v555_v38 }
 0x1b4   : >>> { %v558_v41 = vrot.slane %v557_v40, 2 }
 0x1b6   : >>> { %v559_v42 = vadd.f32 %v558_v41, %v557_v40 }
 0x1b8   : >>> { %v560_v43 = vrot.slane %v559_v42, 1 }
 0x1ba   : >>> { %v561_v44 = vadd.f32 %v560_v43, %v559_v42 }
 0x1bc   : >>> { %829 = vpush %v561_v44 }
 0x1ed   : >>> { %s830_s27 = spop %829 }
 0x1ee   : >>> { %s563_s29 = smin.f32 %s1073_s20, %s830_s27 }
 0x1ef   : >>> { %s565_s30 = smul.f32 %s828_s23, %s563_s29  ;;  %s1436_s29 = smov (!%p564_p10, %s563_s29), 0.0 }
 0x1f0   : >>> { %s569_s20 = ssub.f32 %s1073_s20, %s1436_s29   ;;  %533 = sbr.rel (!%p531_p11) target bundleno = 132 (0x84), region = 156 }
 0x1f1   : >>> { %s1438_s30 = smov (!%p564_p10, %s565_s30), 0.0 }
 0x1f2   : >>> { %s567_s9 = sadd.f32 %s1077_s21, %s1438_s30  }
 0x1f4   : >>> { %s1430_s21 = smov %s567_s9  ;;  %v576_v46 = vstv (%p531_p11), %s567_s9 }
 0x1f5   : >> { %v577_v50 = vmul.f32 %v819_v49, %v576_v46 }
 0x1f7   : >> { %v578_v51 = vadd.f32 %v577_v50, %v571_v47 }
 0x1f9   : >> { %579 = vst [vmem:[%s1206_s16] sm:$0xf] %v578_v51 }
 0x1fa PF: >> { %p820_p12 = scmp.gt.s32.totalorder %s1257_s8, 0 }
 0x1fb   : >> { %s821_s13 = sshll.u32 (!%p820_p12), %s1069_s28, 1 }
 0x1fc   : >> { %583 = sbr.rel (%p820_p12) target bundleno = 515 (0x203), region = 89  ;;  %s585_s15 = scalar_lea.vmem (!%p820_p12), %s1201_s12, %s821_s13 }
 0x201   : >> { %v1093_v52 = vmov 1000000.0  }
 0x202   : >> { %586 = vst [vmem:[%s585_s15] sm:$0x3] %v1093_v52 }
 0x203 PF: >> { %s431_s28 = sadd.s32 1, %s1069_s28  }
 0x204   : >> { %p428_p13 = scmp.ge.s32.totalorder %s431_s28, 4  }
 0x206   : > { %430 = sbr.rel (!%p428_p13) target bundleno = 56 (0x38), region = 167 }
 0x20b PF: > { %s20_s26 = sadd.s32 1, %s1057_s26   ;;  %s1431_s24 = smov %s1053_s25 }
 0x20c   : > { %p17_p0 = scmp.ge.s32.totalorder %s20_s26, 4   ;;  %s1432_s25 = smov %s1434_s10 }
 0x20e   :  { %19 = sbr.rel (!%p17_p0) target bundleno = 3 (0x3), region = 178 }
 0x213   :  { %637 = vsyncpa [#allocation5], 1 }
 0x214   :  { %639 = vsyncpa [#allocation5 + $0x1], 1 }
 0x215   :  { %640 = vsyncpa [#allocation7], 1 }

// kernel: simota_forward.3
= control target key start
LH: loop header
LB: loop body
LE: loop exit
PB: predicated region body
PF: predicated region fallthrough
CT: control target
= control target key end

     0   :  { %s1518_s0 = inlined_call_operand.vmem [shape: f32[32], index: 0, kind: input, shape index: {}]   ;;  %s1519_s1 = inlined_call_operand.vmem [shape: s32[8], index: 1, kind: input, shape index: {}]   ;;  %s1520_s2 = inlined_call_operand.vmem [shape: s32[8], index: 2, kind: input, shape index: {}]   ;;  %s1521_s3 = inlined_call_operand.vmem [shape: f32[8], index: 3, kind: input, shape index: {}]   ;;  %s1522_s4 = inlined_call_operand.vmem [shape: f32[2,4,2,128], index: 4, kind: input, shape index: {}]   ;;  %s1523_s5 = inlined_call_operand.vmem [shape: f32[2,8,2,128], index: 5, kind: input, shape index: {}]   ;;  %s1524_s6 = inlined_call_operand.vmem [shape: f32[2,2,128], index: 6, kind: input, shape index: {}]   ;;  %s1525_s7 = inlined_call_operand.vmem [shape: f32[2,2,128], index: 7, kind: input, shape index: {}]   ;;  %s1526_s8 = inlined_call_operand.vmem [shape: bf16[2,4,2,128], index: 8, kind: input, shape index: {}]   ;;  %s1527_s9 = inlined_call_operand.vmem [shape: f32[2,128], index: 9, kind: input, shape index: {}]   ;;  %s1528_s10 = inlined_call_operand.vmem [shape: f32[2,8,128], index: 10, kind: output, shape index: {0}]   ;;  %s1529_s11 = inlined_call_operand.vmem [shape: f32[2,8,128], index: 11, kind: output, shape index: {1}]   ;;  %s1530_s12 = inlined_call_operand.vmem [shape: f32[2,8,128], index: 12, kind: output, shape index: {2}]  }
   0x1   :  { %1531 = sst [smem:[#allocation16_spill]] %s1518_s0 }
   0x2   :  { %18 = vsyncpa [#allocation7], 0 }
   0x3   :  { %19 = vsyncpa [#allocation9], 0 }
   0x4   :  { %20 = vsyncpa [#allocation12], 0  ;;  %s1320_s21 = smov 0  }
   0x5 LB: > { %s366_s24 = sshll.u32 %s1519_s1, 4  ;;  %s1329_s25 = sadd.s32 4294967295, %s1236_s21   ;;  %s1236_s21 = sphi %s1320_s21, %s26_s21   ;;  %s367_s24 = int_to_ptr.vmem [resolvable:$true] %s366_s24 }
   0x6   : > { %p1018_p0 = scmp.ge.s32.totalorder %s1236_s21, 1  ;;  %p344_p1 = scmp.lt.s32.totalorder %s1236_s21, 3 }
   0x7   : > { %p1087_p2 = scmp.eq.s32.totalorder %s1329_s25, 0  ;;  %s1533_s0 = sld [smem:[#allocation16_spill]] }
   0x8   : > { %p1334_p3 = pnand %p1018_p0, %p344_p1  ;;  %s376_s14 = sshll.u32 %s1520_s2, 4  ;;  %s377_s14 = int_to_ptr.vmem [resolvable:$true] %s376_s14 }
   0x9   : > { %s386_s17 = sshll.u32 %s1521_s3, 4  ;;  %s1250_s18 = smov [#allocation8]   ;;  %s387_s17 = int_to_ptr.vmem [resolvable:$true] %s386_s17 }
   0xa   : > { %p1074_p4 = pneg %p1334_p3  ;;  %s1251_s19 = smov [#allocation6]  }
   0xb   : > { %s1252_s20 = smov [#allocation10]   ;;  %s1253_s22 = smov [#allocation11]  }
   0xc   : > { %p1075_p5 = pnand %p1087_p2, %p1074_p4 }
   0xd   : > { %s356_s29 = sshll.u32 %s1533_s0, 4  ;;  %439 = sbr.rel (%p1334_p3) target bundleno = 349 (0x15d), region = 60  ;;  %s357_s29 = int_to_ptr.vmem [resolvable:$true] %s356_s29 }
   0xe   : > { %1080 = dma.vmem_to_smem (!%p1075_p5), %s367_s24, 16, %s1250_s18, [#allocation9]  }
   0xf   : > { %1077 = dma.vmem_to_smem (!%p1075_p5), %s357_s29, 16, %s1251_s19, [#allocation7]  }
  0x10   : > { %1083 = dma.vmem_to_smem (!%p1075_p5), %s377_s14, 16, %s1252_s20, [#allocation9]  }
  0x11   : > { %1086 = dma.vmem_to_smem (!%p1075_p5), %s387_s17, 16, %s1253_s22, [#allocation12]  }
  0x12   : > { %1223 = dma.done.wait (%p1087_p2), [#allocation7], 16  }
  0x13   : > { %1225 = vsyncadd (%p1087_p2), [#allocation7], 4294967280 }
  0x14   : > { %1227 = dma.done.wait (%p1087_p2), [#allocation9], 32  }
  0x15   : > { %1229 = vsyncadd (%p1087_p2), [#allocation9], 4294967264 }
  0x16   : > { %1231 = dma.done.wait (%p1087_p2), [#allocation12], 16  }
  0x17   : > { %1233 = vsyncadd (%p1087_p2), [#allocation12], 4294967280 }
  0x18   : > { %461 = sfence }
  0x19   : > { %p522_p6 = scmp.lt.s32.totalorder %s1329_s25, 1  ;;  %v1238_v11 = vmov 0.0   ;;  %s1242_s22 = smov 0  }
  0x1b   : > { %s523_s23 = scalar_select %p522_p6, %s1329_s25, 1 }
  0x1d   : > { %s1367_s24 = sshll.u32 %s523_s23, 3  ;;  %s1051_s26 = sshll.u32 %s523_s23, 4 }
  0x1e   : > { %s526_s29 = scalar_lea.vmem %s1522_s4, %s1367_s24  ;;  %s1376_s14 = scalar_lea.vmem %s1523_s5, %s1051_s26 }
  0x1f   : > { %s1033_s15 = sshll.u32 %s523_s23, 1  ;;  %s1035_s16 = sshll.u32 %s523_s23, 2  ;;  %v1378_v0 = vld [vmem:[%s526_s29] sm:$0x3]  ;;  %v1380_v1 = vld [vmem:[%s526_s29 + $0x2] sm:$0x3] }
  0x20   : > { %s1385_s19 = scalar_lea.vmem %s1524_s6, %s1033_s15  ;;  %s539_s27 = scalar_lea.vmem %s1525_s7, %s1033_s15  ;;  %v1390_v2 = vld [vmem:[%s526_s29 + $0x4] sm:$0x3]  ;;  %v1392_v3 = vld [vmem:[%s526_s29 + $0x6] sm:$0x3] }
  0x21   : > { %s1397_s23 = scalar_lea.vmem %s1526_s8, %s1035_s16  ;;  %s547_s0 = scalar_lea.vmem %s1528_s10, %s1367_s24  ;;  %v563_v4 = vsub.f32 %v1390_v2, %v1378_v0  ;;  %v564_v5 = vsub.f32 %v1392_v3, %v1380_v1  ;;  %v1409_v6 = vadd.f32 %v1390_v2, %v1378_v0  ;;  %v1413_v7 = vadd.f32 %v1392_v3, %v1380_v1  ;;  %v1415_v8 = vld [vmem:[%s539_s27] sm:$0x3] }
  0x22   : > { %s551_s16 = scalar_lea.vmem %s1529_s11, %s1367_s24  ;;  %s555_s20 = scalar_lea.vmem %s1530_s12, %s1367_s24 }
  0x23   : > { %v565_v9 = vadd.f32 1e-09, %v564_v5 }
  0x25   : > { %v1425_v10 = vmul.f32 %v565_v9, %v563_v4 }
  0x26 LB: >> { %s1042_s27 = sshll.u32 %s1244_s22, 1  ;;  %s575_s22 = sadd.s32 1, %s1244_s22   ;;  %s1244_s22 = sphi %s1242_s22, %s575_s22   ;;  %v1240_v11 = vphi %v1238_v11, %v1239_v11  }
  0x27   : >> { %s578_s26 = scalar_lea.vmem %s1376_s14, %s1042_s27  ;;  %s588_s28 = scalar_lea.vmem [#allocation2], %s1042_s27 }
  0x28   : >> { %v579_v12 = vld [vmem:[%s578_s26] sm:$0x3]  ;;  %p572_p7 = scmp.ge.s32.totalorder %s575_s22, 8  }
  0x29   : >> { %v580_v13 = vsub.f32 1.0, %v579_v12  ;;  %v584_v14 = vadd.f32 1e-07, %v579_v12  ;;  %v1254_v22 = vmov (%p572_p7), 0.0   ;;  %s1434_s30 = smov (%p572_p7), 0  }
  0x2a   : > { %591 = vst [vmem:[#allocation3] sm:$0x3] (%p572_p7), %v1254_v22 }
  0x2b   : >> { %v581_v15 = vadd.f32 1e-07, %v580_v13  ;;  %1132 = vlog2.f32 %v584_v14  ;;  %592 = vst [vmem:[#allocation4] sm:$0x3] (%p572_p7), %v1254_v22 }
  0x2c   : > { %593 = vst [vmem:[#allocation5] sm:$0x3] (%p572_p7), %v1254_v22 }
  0x2d   : >> { %1134 = vlog2.f32 %v581_v15 }
  0x31   : >> { %v1133_v16 = vpop.eup %1132 }
  0x32   : >> { %v586_v17 = vmul.f32 0.6931472, %v1133_v16 }
  0x33   : >> { %v1135_v18 = vpop.eup %1134 }
  0x34   : >> { %v583_v19 = vmul.f32 0.6931472, %v1135_v18 }
  0x35   : > { %574 = sbr.rel (!%p572_p7) target bundleno = 38 (0x26), region = 168 }
  0x36   : >> { %v587_v20 = vsub.f32 %v583_v19, %v586_v17  ;;  %v1428_v11 = vsub.f32 %v1240_v11, %v583_v19  }
  0x38   : >> { %v1534_v21 = vmov %v1428_v11  ;;  %589 = vst [vmem:[%s588_s28] sm:$0x3] %v587_v20 }
  0x39   : >> { %v1239_v11 = vmov %v1534_v21  }
  0x3a LB: >> { %s1043_s13 = sshll.u32 %s1329_s25, 2  ;;  %s1248_s30 = sphi %s1434_s30, %s599_s30  }
  0x3b   : >> { %s1441_s29 = sadd.s32 %s1248_s30, %s1043_s13 }
  0x3c   : >> { %s602_s14 = sld [smem:[#allocation10 + %s1441_s29]] }
  0x42   : >> { %p1044_p8 = scmp.le.s32.totalorder %s602_s14, 0 }
  0x43   : >> { %s1045_s15 = sshll.u32 (!%p1044_p8), %s1441_s29, 2 }
  0x44   : >> { %606 = sbr.rel (%p1044_p8) target bundleno = 146 (0x92), region = 94  ;;  %s1445_s17 = sld [smem:[#allocation6 + %s1045_s15]] (!%p1044_p8) }
  0x45   : >> { %s609_s18 = sadd.s32 (!%p1044_p8), 1, %s1045_s15  ;;  %s611_s27 = sadd.s32 (!%p1044_p8), 2, %s1045_s15 }
  0x46   : >> { %s1447_s22 = sld [smem:[#allocation6 + %s609_s18]] (!%p1044_p8)  ;;  %s613_s28 = sadd.s32 (!%p1044_p8), 3, %s1045_s15 }
  0x47   : >> { %s1449_s26 = sld [smem:[#allocation6 + %s611_s27]] (!%p1044_p8) }
  0x48   : >> { %s1451_s13 = sld [smem:[#allocation6 + %s613_s28]] (!%p1044_p8) }
  0x49   : >> { %s616_s28 = sld [smem:[#allocation11 + %s1441_s29]]  ;;  %v720_v17 = vld [vmem:[#allocation4] sm:$0x3]  ;;  %v728_v18 = vld [vmem:[#allocation5] sm:$0x3] }
  0x4a   : >> { %v625_v23 = vstv %s1445_s17 }
  0x4b   : >> { %v626_v24 = vmax.f32 %v1378_v0, %v625_v23  ;;  %v657_v30 = vmin.f32 %v1378_v0, %v625_v23 }
  0x4c   : >> { %v631_v25 = vstv %s1447_s22 }
  0x4d   : >> { %s620_s14 = ssub.f32 %s1449_s26, %s1445_s17  ;;  %v623_v26 = vstv %s1449_s26  ;;  %v632_v27 = vmax.f32 %v1380_v1, %v631_v25  ;;  %v660_v34 = vmin.f32 %v1380_v1, %v631_v25 }
  0x4e   : >> { %s621_s18 = ssub.f32 %s1451_s13, %s1447_s22  ;;  %v624_v28 = vmin.f32 %v1390_v2, %v623_v26  ;;  %v629_v29 = vstv %s1451_s13  ;;  %v656_v32 = vmax.f32 %v1390_v2, %v623_v26 }
  0x4f   : >> { %v630_v31 = vmin.f32 %v1392_v3, %v629_v29  ;;  %v659_v33 = vmax.f32 %v1392_v3, %v629_v29  ;;  %v676_v50 = vstv %s616_s28  ;;  %s670_s28 = sadd.f32 %s1451_s13, %s1447_s22 }
  0x50   : >> { %s622_s15 = sadd.f32 1e-09, %s621_s18  ;;  %v627_v35 = vsub.f32 %v624_v28, %v626_v24  ;;  %v658_v39 = vsub.f32 %v656_v32, %v657_v30  ;;  %v677_v53 = vsub.f32 %v676_v50, %v1415_v8 }
  0x51   : >> { %v633_v36 = vsub.f32 %v630_v31, %v632_v27  ;;  %v661_v40 = vsub.f32 %v659_v33, %v660_v34  ;;  %s615_s18 = sld [smem:[#allocation8 + %s1441_s29]]  ;;  %v671_v20 = vstv %s670_s28 }
  0x52   : >> { %v628_v37 = vmax.f32 %v627_v35, 0.0  ;;  %s636_s27 = smul.f32 %s622_s15, %s620_s14  ;;  %v662_v45 = vmul.f32 %v658_v39, %v658_v39  ;;  %s617_s14 = scalar_lea.vmem %s1397_s23, %s1248_s30  ;;  %v678_v59 = vmul.f32 %v677_v53, %v677_v53  ;;  %v672_v28 = vsub.f32 %v671_v20, %v1413_v7 }
  0x53   : >> { %v634_v38 = vmax.f32 %v633_v36, 0.0  ;;  %v663_v46 = vmul.f32 %v661_v40, %v661_v40  ;;  %v618_v57 = vld [vmem:[%s617_s14] sm:$0x1]  ;;  %s666_s29 = sadd.f32 %s1449_s26, %s1445_s17 }
  0x54   : >> { %v637_v41 = vstv %s636_s27  ;;  %v619_v63 = vunpack.c.l.bf16 %v618_v57  ;;  %v679_v5 = vmul.f32 0.40528473, %v678_v59  ;;  %v673_v31 = vmul.f32 %v672_v28, %v672_v28 }
  0x55   : >> { %v635_v42 = vmul.f32 %v634_v38, %v628_v37  ;;  %v638_v43 = vadd.f32 %v637_v41, %v1425_v10  ;;  %v664_v48 = vadd.f32 %v663_v46, %v662_v45  ;;  %v667_v19 = vstv %s666_s29 }
  0x56   : >> { %v729_v24 = vadd.f32 %v728_v18, %v619_v63  ;;  %v668_v27 = vsub.f32 %v667_v19, %v1409_v6 }
  0x57   : >> { %v639_v44 = vsub.f32 %v638_v43, %v635_v42  ;;  %v1472_v49 = vadd.f32 1e-09, %v664_v48  ;;  %s1046_s15 = sshll.u32 %s615_s18, 1 }
  0x58   : >> { %s722_s27 = scalar_lea.vmem [#allocation2], %s1046_s15  ;;  %730 = vst [vmem:[#allocation5] sm:$0x3] %v729_v24  ;;  %v669_v30 = vmul.f32 %v668_v27, %v668_v27 }
  0x59   : >> { %v640_v47 = vadd.f32 1e-09, %v639_v44  ;;  %v723_v9 = vld [vmem:[%s722_s27] sm:$0x3]  ;;  %vm702_vm4 = vweird.f32 %v1472_v49  ;;  %v708_v33 = vand.u32 2147483648, %v1472_v49 }
  0x5a   : >> { %v724_v12 = vadd.f32 %v723_v9, %v1534_v21  ;;  %v706_v36 = vand.u32 2147483647, %v1472_v49  ;;  %v674_v37 = vadd.f32 %v673_v31, %v669_v30 }
  0x5b   : >> { %1136 = vrcp.f32 %v640_v47  ;;  %v652_v54 = vand.u32 2147483648, %v640_v47  ;;  %vm646_vm0 = vweird.f32 %v640_v47  ;;  %v650_v56 = vand.u32 2147483647, %v640_v47 }
  0x5c   : >> { %1138 = vrcp.f32 %v1472_v49  ;;  %v725_v15 = vmul.f32 %v724_v12, %v619_v63  ;;  %v709_v41 = vor.u32 1.1754944e-38, %v708_v33  ;;  %vm707_vm9 = vcmp.eq.f32.partialorder %v706_v36, 8.507059e+37 }
  0x5d   : >> { %v653_v60 = vor.u32 1.1754944e-38, %v652_v54  ;;  %vm651_vm3 = vcmp.eq.f32.partialorder %v650_v56, 8.507059e+37  ;;  %v675_v45 = vmul.f32 0.25, %v674_v37  ;;  %v715_v56 = vld [vmem:[#allocation3] sm:$0x3] }
  0x5e   : >> { %v726_v23 = vadd.f32 %v725_v15, %v720_v17 }
  0x60   : >> { %727 = vst [vmem:[#allocation4] sm:$0x3] %v726_v23 }
  0x61   : >> { %v1137_v51 = vpop.eup %1136 }
  0x62   : >> { %v642_v52 = vmul.f32 %v1137_v51, %v640_v47  ;;  %vm647_vm1 = vweird.f32 %v1137_v51  ;;  %v1139_v62 = vpop.eup %1138 }
  0x63   : >> { %vm648_vm2 = vmor %vm646_vm0, %vm647_vm1  ;;  %v698_v14 = vmul.f32 %v1139_v62, %v1472_v49  ;;  %vm703_vm5 = vweird.f32 %v1139_v62 }
  0x64   : >> { %v643_v55 = vsub.f32 1.0, %v642_v52  ;;  %vm704_vm6 = vmor %vm702_vm4, %vm703_vm5 }
  0x65   : >> { %v699_v26 = vsub.f32 1.0, %v698_v14 }
  0x66   : >> { %v644_v58 = vmul.f32 %v1137_v51, %v643_v55 }
  0x67   : >> { %v700_v29 = vmul.f32 %v1139_v62, %v699_v26 }
  0x68   : >> { %v645_v61 = vadd.f32 %v1137_v51, %v644_v58 }
  0x69   : >> { %v701_v35 = vadd.f32 %v1139_v62, %v700_v29 }
  0x6a   : >> { %v649_v4 = vsel %vm648_vm2, %v1137_v51, %v645_v61 }
  0x6b   : >> { %v654_v11 = vsel %vm651_vm3, %v653_v60, %v649_v4  ;;  %v705_v43 = vsel %vm704_vm6, %v1139_v62, %v701_v35 }
  0x6c   : >> { %v655_v13 = vmul.f32 %v654_v11, %v635_v42  ;;  %v710_v47 = vsel %vm707_vm9, %v709_v41, %v705_v43 }
  0x6d   : >> { %v711_v51 = vmul.f32 %v710_v47, %v675_v45 }
  0x6e   : >> { %v680_v16 = vsub.f32 %v679_v5, %v655_v13 }
  0x70   : >> { %v681_v25 = vadd.f32 1.0, %v680_v16 }
  0x72   : >> { %1140 = vrcp.f32 %v681_v25  ;;  %v693_v38 = vand.u32 2147483648, %v681_v25  ;;  %vm687_vm7 = vweird.f32 %v681_v25  ;;  %v691_v40 = vand.u32 2147483647, %v681_v25 }
  0x74   : >> { %v694_v44 = vor.u32 1.1754944e-38, %v693_v38  ;;  %vm692_vm11 = vcmp.eq.f32.partialorder %v691_v40, 8.507059e+37 }
  0x78   : >> { %v1141_v32 = vpop.eup %1140 }
  0x79   : >> { %v683_v34 = vmul.f32 %v1141_v32, %v681_v25  ;;  %vm688_vm8 = vweird.f32 %v1141_v32 }
  0x7a   : >> { %vm689_vm10 = vmor %vm687_vm7, %vm688_vm8 }
  0x7b   : >> { %v684_v39 = vsub.f32 1.0, %v683_v34 }
  0x7d   : >> { %v685_v42 = vmul.f32 %v1141_v32, %v684_v39 }
  0x7f   : >> { %v686_v46 = vadd.f32 %v1141_v32, %v685_v42 }
  0x81   : >> { %v690_v48 = vsel %vm689_vm10, %v1141_v32, %v686_v46 }
  0x82   : >> { %v695_v50 = vsel %vm692_vm11, %v694_v44, %v690_v48 }
  0x83   : >> { %v696_v49 = vmul.f32 %v695_v50, %v679_v5 }
  0x85   : >> { %v712_v52 = vmul.f32 %v696_v49, %v679_v5 }
  0x87   : >> { %v713_v53 = vadd.f32 %v712_v52, %v711_v51 }
  0x89   : >> { %v714_v54 = vsub.f32 %v655_v13, %v713_v53 }
  0x8b   : >> { %v716_v55 = vsub.f32 1.0, %v714_v54 }
  0x8d   : >> { %v717_v57 = vmul.f32 %v716_v55, %v619_v63 }
  0x8f   : >> { %v718_v58 = vadd.f32 %v717_v57, %v715_v56 }
  0x91   : >> { %719 = vst [vmem:[#allocation3] sm:$0x3] %v718_v58 }
  0x92 PF: >> { %s599_s30 = sadd.s32 1, %s1248_s30  }
  0x93   : >> { %p596_p9 = scmp.ge.s32.totalorder %s599_s30, 4  }
  0x94   : > { %vm751_vm12 = vcmask (%p596_p9), 1041408   ;;  %v731_v61 = vld [vmem:[%s1385_s19] sm:$0x3] (%p596_p9)  ;;  %v732_v62 = vld [vmem:[#allocation5] sm:$0x3] (%p596_p9) }
  0x95   : > { %598 = sbr.rel (!%p596_p9) target bundleno = 58 (0x3a), region = 179  ;;  %v737_v4 = vadd.f32 (%p596_p9), 1e-07, %v731_v61  ;;  %v742_v5 = vsub.f32 (%p596_p9), 1.0, %v731_v61  ;;  %vm733_vm13 = vcmp.gt.f32.partialorder (%p596_p9), %v732_v62, 0.0 }
  0x96   : > { %v765_v63 = vld [vmem:[#allocation4] sm:$0x3] (%p596_p9)  ;;  %v1047_v11 = vsel (%p596_p9), %vm733_vm13, 1.0, %v1254_v22  ;;  %v748_v10 = vld [vmem:[%s1527_s9] sm:$0x3] (%p596_p9) }
  0x97   : > { %1142 = vlog2.f32 (%p596_p9), %v737_v4  ;;  %v743_v9 = vadd.f32 (%p596_p9), 1e-07, %v742_v5  ;;  %v766_v12 = vsel (%p596_p9), %vm751_vm12, %v765_v63, 0.0  ;;  %v736_v13 = vsub.f32 (%p596_p9), 0.0, %v1047_v11 }
  0x98   : > { %v750_v59 = vld [vmem:[#allocation3] sm:$0x3] (%p596_p9)  ;;  %v741_v2 = vsub.f32 (%p596_p9), 1.0, %v1047_v11 }
  0x99   : > { %v752_v60 = vsel (%p596_p9), %vm751_vm12, %v750_v59, 0.0  ;;  %1144 = vlog2.f32 (%p596_p9), %v743_v9 }
  0x9a   : > { %753 = vadd.xlane.f32.xlu0 %v752_v60 }
  0x9d   : > { %v1143_v0 = vpop.eup %1142 }
  0x9e   : > { %v739_v1 = vmul.f32 0.6931472, %v1143_v0 }
  0x9f   : > { %v1145_v3 = vpop.eup %1144 }
  0xa0   : > { %v740_v6 = vmul.f32 %v739_v1, %v736_v13  ;;  %v745_v7 = vmul.f32 0.6931472, %v1145_v3 }
  0xa2   : > { %767 = vadd.xlane.f32.xlu0 %v766_v12  ;;  %v746_v8 = vmul.f32 %v745_v7, %v741_v2 }
  0xa4   : > { %v747_v21 = vsub.f32 %v740_v6, %v746_v8 }
  0xa6   : > { %v749_v14 = vmul.f32 %v748_v10, %v747_v21 }
  0xa8   : > { %v779_v22 = vsel %vm751_vm12, %v749_v14, 0.0 }
  0xa9   : > { %780 = vadd.xlane.f32.xlu1 %v779_v22 }
 0x10d   : > { %v754_v15 = vpop.xlane.xlu0 %753 }
 0x10e   : > { %v755_v16 = vrot.slane %v754_v15, 4 }
 0x110   : > { %v756_v17 = vadd.f32 %v755_v16, %v754_v15 }
 0x112   : > { %v757_v18 = vrot.slane %v756_v17, 2 }
 0x114   : > { %v758_v19 = vadd.f32 %v757_v18, %v756_v17 }
 0x115   : > { %v768_v20 = vpop.xlane.xlu0 %767 }
 0x116   : > { %v769_v23 = vrot.slane %v768_v20, 4  ;;  %v759_v24 = vrot.slane %v758_v19, 1 }
 0x118   : > { %v770_v25 = vadd.f32 %v769_v23, %v768_v20  ;;  %v760_v26 = vadd.f32 %v759_v24, %v758_v19 }
 0x11a   : > { %v771_v27 = vrot.slane %v770_v25, 2  ;;  %1052 = vpush %v760_v26 }
 0x11c   : > { %v772_v28 = vadd.f32 %v771_v27, %v770_v25  ;;  %v781_v31 = vpop.xlane.xlu1 %780 }
 0x11d   : > { %v782_v32 = vrot.slane %v781_v31, 4 }
 0x11e   : > { %v773_v29 = vrot.slane %v772_v28, 1 }
 0x11f   : > { %v783_v33 = vadd.f32 %v782_v32, %v781_v31 }
 0x120   : > { %v774_v30 = vadd.f32 %v773_v29, %v772_v28 }
 0x121   : > { %v784_v34 = vrot.slane %v783_v33, 2 }
 0x122   : > { %1054 = vpush %v774_v30 }
 0x123   : > { %v785_v35 = vadd.f32 %v784_v34, %v783_v33 }
 0x125   : > { %v786_v36 = vrot.slane %v785_v35, 1 }
 0x127   : > { %v787_v37 = vadd.f32 %v786_v36, %v785_v35 }
 0x129   : > { %1056 = vpush %v787_v37 }
 0x14b   : > { %s1053_s23 = spop %1052 }
 0x14c   : > { %v762_v38 = vstv %s1053_s23 }
 0x14d   : > { %764 = vst [vmem:[%s547_s0] sm:$0xff] %v762_v38 }
 0x153   : > { %s1055_s22 = spop %1054 }
 0x154   : > { %v776_v39 = vstv %s1055_s22 }
 0x155   : > { %778 = vst [vmem:[%s551_s16] sm:$0xff] %v776_v39 }
 0x15a   : > { %s1057_s18 = spop %1056 }
 0x15b   : > { %v789_v40 = vstv %s1057_s18 }
 0x15c   : > { %791 = vst [vmem:[%s555_s20] sm:$0xff] %v789_v40 }
 0x15d PF: > { %s26_s21 = sadd.s32 1, %s1236_s21  }
 0x15e   : > { %p23_p10 = scmp.ge.s32.totalorder %s26_s21, 4  }
 0x160   :  { %25 = sbr.rel (!%p23_p10) target bundleno = 5 (0x5), region = 190 }
 0x165   :  { %839 = vsyncpa [#allocation7], 1 }
 0x166   :  { %841 = vsyncpa [#allocation7 + $0x1], 1 }
 0x167   :  { %842 = vsyncpa [#allocation9], 1 }
 0x168   :  { %843 = vsyncpa [#allocation12], 1 }

</bundles_post_ra>
